<compile_context>
chip_gen: v7x
topology: tpu7x:2x2x1
jax: 0.10.0
libtpu: 0.0.40
codegen_flags: <defaults>
</compile_context>

<pallas_src>
import functools

import jax
import jax.numpy as jnp
import numpy as np
from jax import lax
from jax.experimental import pallas as pl
from jax.experimental.pallas import tpu as pltpu

EPS = 1e-5
AMIN = 1e-10
LOG10_FACTOR = float(10.0 / np.log(10.0))   # 10*log10(x) == LOG10_FACTOR * ln(x)


# --------------------- librosa-compatible mel filterbank (numpy) --------------
def _hz_to_mel(f):
    f = np.asarray(f, dtype=np.float64)
    f_sp = 200.0 / 3
    mels = f / f_sp
    min_log_hz = 1000.0
    min_log_mel = min_log_hz / f_sp
    logstep = np.log(6.4) / 27.0
    return np.where(f >= min_log_hz,
                    min_log_mel + np.log(np.maximum(f, 1e-10) / min_log_hz) / logstep,
                    mels)


def _mel_to_hz(m):
    m = np.asarray(m, dtype=np.float64)
    f_sp = 200.0 / 3
    freqs = f_sp * m
    min_log_hz = 1000.0
    min_log_mel = min_log_hz / f_sp
    logstep = np.log(6.4) / 27.0
    return np.where(m >= min_log_mel,
                    min_log_hz * np.exp(logstep * (m - min_log_mel)),
                    freqs)


def mel_filterbank(sr, n_fft, n_mels=128, fmin=0.0, fmax=None):
    """Replicates librosa.filters.mel defaults (Slaney mel scale, slaney norm)."""
    if fmax is None:
        fmax = sr / 2.0
    n_freq = n_fft // 2 + 1
    fftfreqs = np.linspace(0.0, sr / 2.0, n_freq)
    mel_pts = _mel_to_hz(np.linspace(_hz_to_mel(fmin), _hz_to_mel(fmax), n_mels + 2))
    fdiff = np.diff(mel_pts)
    ramps = mel_pts[:, None] - fftfreqs[None, :]
    weights = np.zeros((n_mels, n_freq), np.float64)
    for i in range(n_mels):
        lower = -ramps[i] / fdiff[i]
        upper = ramps[i + 2] / fdiff[i + 1]
        weights[i] = np.maximum(0.0, np.minimum(lower, upper))
    enorm = 2.0 / (mel_pts[2:n_mels + 2] - mel_pts[:n_mels])   # slaney normalization
    weights *= enorm[:, None]
    return weights.astype(np.float32)


# ------------------------------ shared helpers --------------------------------
def _dft_matrices(n_fft):
    """Onesided real-DFT basis (rectangular window): (n_fft, n_freq) cos / -sin."""
    n_freq = n_fft // 2 + 1
    n = np.arange(n_fft, dtype=np.float64)[:, None]
    f = np.arange(n_freq, dtype=np.float64)[None, :]
    ang = 2.0 * np.pi * n * f / n_fft
    return np.cos(ang).astype(np.float32), (-np.sin(ang)).astype(np.float32)


def _frame_signal(signal, n_fft, hop, n_frames_out=None):
    """torch.stft framing: center=True, reflect pad, win_length=n_fft.

    If n_frames_out > n_frames, the extra rows repeat the last valid frame; their
    results are masked out of the BN statistics and sliced off the final output."""
    pad = n_fft // 2
    x = jnp.pad(signal, ((0, 0), (pad, pad)), mode="reflect")
    n_frames = 1 + (signal.shape[1] + 2 * pad - n_fft) // hop
    if n_frames_out is None:
        n_frames_out = n_frames
    rows = np.minimum(np.arange(n_frames_out), n_frames - 1)
    idx = rows[:, None] * hop + np.arange(n_fft)[None, :]
    return x[:, idx]                                   # (B, n_frames_out, n_fft)


# ------------------------------- Pallas kernels --------------------------------
def _spectro_kernel(frames_ref, basis_ref, melT_ref, out_ref, stats_ref, *,
                    n_frames, tile_rows, f_pad):
    """One (batch, 256-frame tile): fused STFT -> power -> mel -> dB.

    Writes the transposed (n_mels, tile_rows) log-mel tile (module layout) plus
    per-tile partial sum / sum-of-squares for the BatchNorm batch statistics."""
    t = pl.program_id(1)
    row = t * tile_rows + lax.broadcasted_iota(jnp.int32, (tile_rows, 1), 0)
    valid = row < n_frames                                                  # (tT, 1)

    x = frames_ref[...]                                                     # (tT, n_fft) bf16
    # One MXU pass against the fused [cos | -sin] basis (f32 accumulation).
    spec = jnp.dot(x, basis_ref[...], preferred_element_type=jnp.float32)   # (tT, 2*f_pad)
    re = spec[:, :f_pad]
    im = spec[:, f_pad:]
    power = re * re + im * im                     # zero-padded freq lanes stay exactly 0
    mel = jnp.dot(power.astype(jnp.bfloat16), melT_ref[...],
                  preferred_element_type=jnp.float32)                       # (tT, n_mels)
    logmel = LOG10_FACTOR * jnp.log(jnp.maximum(mel, AMIN))

    # Fused output transpose: aligned (tT,128) -> (128,tT), rides the XLU slot.
    out_ref[...] = logmel.T

    # Per-tile partial BN statistics, padded rows excluded.
    masked = jnp.where(valid, logmel, 0.0)
    stats_ref[0:1, :] = jnp.sum(masked, axis=0, keepdims=True)
    stats_ref[1:2, :] = jnp.sum(masked * logmel, axis=0, keepdims=True)


def _bn_kernel(params_ref, x_ref, o_ref):
    """BatchNorm2d(1), train mode: pure in-place scale/shift (scalars from SMEM)."""
    scale = params_ref[0]
    shift = params_ref[1]
    o_ref[...] = x_ref[...] * scale + shift


# ------------------------------- Pallas wrapper ---------------------------------
@functools.partial(jax.jit, static_argnames=("n_fft", "hop", "gamma", "beta", "eps"))
def spectrogram_forward(signal, mel_fb, n_fft, hop, gamma=1.0, beta=0.0, eps=EPS):
    """Pallas forward of the Spectrogram module.

    signal: (B, L) float32.  Returns (B, 1, n_mels, T) float32 (module layout)."""
    B, L = signal.shape
    n_freq = n_fft // 2 + 1
    n_mels = mel_fb.shape[0]
    f_pad = ((n_freq + 127) // 128) * 128        # lane-dense onesided-frequency axis

    pad = n_fft // 2
    T = 1 + (L + 2 * pad - n_fft) // hop
    tT = 256                                     # frame tile (multiple of 256 -> v6e/v7x MXU)
    T_pad = ((T + tT - 1) // tT) * tT
    T_tiles = T_pad // tT

    # Fused [cos | -sin] DFT basis, zero-padded to 2*f_pad lanes (static constant).
    cos_m, sin_m = _dft_matrices(n_fft)
    basis = np.zeros((n_fft, 2 * f_pad), np.float32)
    basis[:, :n_freq] = cos_m
    basis[:, f_pad:f_pad + n_freq] = sin_m
    basis_bf = jnp.asarray(basis, jnp.bfloat16)

    melT = jnp.zeros((f_pad, n_mels), jnp.float32)
    melT = melT.at[:n_freq, :].set(jnp.asarray(mel_fb, jnp.float32).T)
    melT_bf = melT.astype(jnp.bfloat16)

    # TODO(synk): build the overlapping frames in-kernel from the reflect-padded
    # signal (memory_space=pl.ANY + manual DMA) to avoid materializing the
    # ~2.5x-larger frames array in HBM.
    frames = _frame_signal(signal, n_fft, hop, T_pad).astype(jnp.bfloat16)  # (B, T_pad, n_fft)

    kern = functools.partial(_spectro_kernel, n_frames=T, tile_rows=tT, f_pad=f_pad)
    logmel_t, stats = pl.pallas_call(
        kern,
        grid=(B, T_tiles),
        in_specs=[
            pl.BlockSpec((None, tT, n_fft), lambda b, t: (b, t, 0)),
            pl.BlockSpec((n_fft, 2 * f_pad), lambda b, t: (0, 0)),
            pl.BlockSpec((f_pad, n_mels), lambda b, t: (0, 0)),
        ],
        out_specs=(
            pl.BlockSpec((None, n_mels, tT), lambda b, t: (b, 0, t)),
            pl.BlockSpec((None, None, 2, n_mels), lambda b, t: (b, t, 0, 0)),
        ),
        out_shape=(
            jax.ShapeDtypeStruct((B, n_mels, T_pad), jnp.float32),
            jax.ShapeDtypeStruct((B, T_tiles, 2, n_mels), jnp.float32),
        ),
        compiler_params=pltpu.CompilerParams(
            dimension_semantics=("parallel", "parallel")),
    )(frames, basis_bf, melT_bf)

    # Global BatchNorm2d(1) batch stats from the per-tile partials (tiny reduction).
    valid_rows = np.minimum(tT, np.maximum(T - np.arange(T_tiles) * tT, 0)).astype(np.float32)
    counts = valid_rows * n_mels                         # elements per (b, t) tile
    sums = jnp.sum(stats[:, :, 0, :], axis=-1)           # (B, T_tiles)
    sqs = jnp.sum(stats[:, :, 1, :], axis=-1)            # (B, T_tiles)
    total = float(B * T * n_mels)
    mean = jnp.sum(sums) / total
    # Per-tile grouped sum((x-mean)^2): less f32 cancellation than global E[x^2]-E[x]^2.
    m2 = jnp.sum(sqs - 2.0 * mean * sums + counts * (mean * mean))
    var = jnp.maximum(m2 / total, 0.0)                   # biased, like PyTorch train-mode BN
    scale = gamma * lax.rsqrt(var + eps)
    shift = beta - mean * scale
    bn_params = jnp.stack([scale, shift]).astype(jnp.float32)   # (2,) -> SMEM scalars

    out_padded = pl.pallas_call(
        _bn_kernel,
        grid=(B, T_tiles),
        in_specs=[
            pl.BlockSpec(memory_space=pltpu.MemorySpace.SMEM),
            pl.BlockSpec((None, n_mels, tT), lambda b, t: (b, 0, t)),
        ],
        out_specs=pl.BlockSpec((None, n_mels, tT), lambda b, t: (b, 0, t)),
        out_shape=jax.ShapeDtypeStruct((B, n_mels, T_pad), jnp.float32),
        input_output_aliases={1: 0},                     # in-place scale/shift
        compiler_params=pltpu.CompilerParams(
            dimension_semantics=("parallel", "parallel")),
    )(bn_params, logmel_t)

    # Trim frame padding; layout is already the module's (B, 1, n_mels, T).
    return out_padded[:, None, :, :T]


# ------------------------------ pure-JAX reference -------------------------------
def spectrogram_ref(signal, mel_fb, n_fft, hop, gamma=1.0, beta=0.0, eps=EPS):
    """Reference forward (same bf16 matmul operands as the kernel, f32 accumulation)."""
    B = signal.shape[0]
    n_mels = mel_fb.shape[0]
    cos_m, sin_m = _dft_matrices(n_fft)

    frames = _frame_signal(signal, n_fft, hop).astype(jnp.bfloat16)   # (B, T, n_fft)
    T = frames.shape[1]
    fr2 = frames.reshape(B * T, n_fft)
    re = jnp.dot(fr2, jnp.asarray(cos_m, jnp.bfloat16), preferred_element_type=jnp.float32)
    im = jnp.dot(fr2, jnp.asarray(sin_m, jnp.bfloat16), preferred_element_type=jnp.float32)
    power = re * re + im * im                                         # (B*T, n_freq) f32
    mel = jnp.dot(power.astype(jnp.bfloat16),
                  jnp.asarray(np.asarray(mel_fb).T, jnp.bfloat16),
                  preferred_element_type=jnp.float32)                 # (B*T, n_mels)
    logmel = 10.0 * jnp.log10(jnp.maximum(mel, AMIN))
    x = jnp.transpose(logmel.reshape(B, T, n_mels), (0, 2, 1))[:, None]   # (B,1,M,T)
    mean = jnp.mean(x)
    var = jnp.mean((x - mean) ** 2)                                   # biased
    return (x - mean) * lax.rsqrt(var + eps) * gamma + beta


# ------------------------------------ main ---------------------------------------
if __name__ == "__main__":
    rate = 16000
    n_fft = round(0.025 * rate)          # 400
    hop = round(0.01 * rate)             # 160
    B, L = 2, 3200                       # 0.2 s of audio per batch element
    mel_fb = mel_filterbank(rate, n_fft)   # (128, 201) — librosa.filters.mel defaults

    key = jax.random.PRNGKey(0)
    signal = jax.random.normal(key, (B, L), jnp.float32)

    out = jax.block_until_ready(spectrogram_forward(signal, mel_fb, n_fft, hop))
    ref = jax.block_until_ready(spectrogram_ref(signal, mel_fb, n_fft, hop))

    T = 1 + L // hop
    assert out.shape == (B, 1, mel_fb.shape[0], T), out.shape
    np.testing.assert_allclose(np.asarray(out), np.asarray(ref), rtol=1e-3, atol=5e-3)
    print("KERNEL_OK")
</pallas_src>

<mosaic_0001>
module attributes {stable_mosaic.version = 11 : i64} {
  func.func @_spectro_kernel(%arg0: i32, %arg1: i32, %arg2: memref<1x256x400xbf16, #tpu.memory_space<vmem>>, %arg3: memref<400x512xbf16, #tpu.memory_space<vmem>>, %arg4: memref<256x128xbf16, #tpu.memory_space<vmem>>, %arg5: memref<1x128x256xf32, #tpu.memory_space<vmem>>, %arg6: memref<1x1x2x128xf32, #tpu.memory_space<vmem>>) attributes {dimension_semantics = [#tpu.dimension_semantics<parallel>, #tpu.dimension_semantics<parallel>], iteration_bounds = array<i64: 2, 1>, scalar_prefetch = 0 : i64, scratch_operands = 0 : i64, tpu.core_type = #tpu.core_type<tc>, window_params = [{transform_indices = @transform_0, window_bounds = array<i64: 1, 256, 400>}, {pipeline_mode = #tpu.pipeline_mode<synchronous>, transform_indices = @transform_1, window_bounds = array<i64: 400, 512>}, {pipeline_mode = #tpu.pipeline_mode<synchronous>, transform_indices = @transform_2, window_bounds = array<i64: 256, 128>}, {transform_indices = @transform_3, window_bounds = array<i64: 1, 128, 256>}, {transform_indices = @transform_4, window_bounds = array<i64: 1, 1, 2, 128>}]} {
    %c256_i32 = arith.constant 256 : i32
    %0 = arith.muli %arg1, %c256_i32 : i32
    %1 = tpu.iota {dimensions = array<i32: 0>} : vector<256x1xi32>
    %2 = vector.broadcast %0 : i32 to vector<256x1xi32>
    %3 = arith.addi %2, %1 : vector<256x1xi32>
    %c21_i32 = arith.constant 21 : i32
    %4 = vector.broadcast %c21_i32 : i32 to vector<256x1xi32>
    %5 = arith.cmpi slt, %3, %4 : vector<256x1xi32>
    %c0 = arith.constant 0 : index
    %c0_0 = arith.constant 0 : index
    %c0_1 = arith.constant 0 : index
    %6 = vector.load %arg2[%c0, %c0_0, %c0_1] : memref<1x256x400xbf16, #tpu.memory_space<vmem>>, vector<1x256x400xbf16>
    %7 = vector.shape_cast %6 : vector<1x256x400xbf16> to vector<256x400xbf16>
    %c0_2 = arith.constant 0 : index
    %c0_3 = arith.constant 0 : index
    %8 = vector.load %arg3[%c0_2, %c0_3] : memref<400x512xbf16, #tpu.memory_space<vmem>>, vector<400x512xbf16>
    %cst = arith.constant dense<0.000000e+00> : vector<256x512xf32>
    %9 = tpu.matmul %7, %8, %cst {dimension_numbers = #tpu.dot_dimension_numbers<[1], [0], [0], [1], [0, 0, 1, 1], [], []>} : vector<256x400xbf16>, vector<400x512xbf16>, vector<256x512xf32> -> vector<256x512xf32>
    %10 = vector.extract_strided_slice %9 {offsets = [0, 0], sizes = [256, 256], strides = [1, 1]} : vector<256x512xf32> to vector<256x256xf32>
    %11 = vector.extract_strided_slice %9 {offsets = [0, 256], sizes = [256, 256], strides = [1, 1]} : vector<256x512xf32> to vector<256x256xf32>
    %12 = arith.mulf %10, %10 : vector<256x256xf32>
    %13 = arith.mulf %11, %11 : vector<256x256xf32>
    %14 = arith.addf %12, %13 : vector<256x256xf32>
    %15 = arith.truncf %14 : vector<256x256xf32> to vector<256x256xbf16>
    %c0_4 = arith.constant 0 : index
    %c0_5 = arith.constant 0 : index
    %16 = vector.load %arg4[%c0_4, %c0_5] : memref<256x128xbf16, #tpu.memory_space<vmem>>, vector<256x128xbf16>
    %cst_6 = arith.constant dense<0.000000e+00> : vector<256x128xf32>
    %17 = tpu.matmul %15, %16, %cst_6 {dimension_numbers = #tpu.dot_dimension_numbers<[1], [0], [0], [1], [0, 0, 1, 1], [], []>} : vector<256x256xbf16>, vector<256x128xbf16>, vector<256x128xf32> -> vector<256x128xf32>
    %cst_7 = arith.constant 1.000000e-10 : f32
    %18 = vector.broadcast %cst_7 : f32 to vector<256x128xf32>
    %19 = arith.maximumf %17, %18 : vector<256x128xf32>
    %20 = math.log %19 : vector<256x128xf32>
    %cst_8 = arith.constant 4.34294462 : f32
    %21 = vector.broadcast %cst_8 : f32 to vector<256x128xf32>
    %22 = arith.mulf %21, %20 : vector<256x128xf32>
    %23 = tpu.transpose %22, [1, 0] : vector<256x128xf32> -> vector<128x256xf32>
    %c0_9 = arith.constant 0 : index
    %c0_10 = arith.constant 0 : index
    %c0_11 = arith.constant 0 : index
    %24 = vector.load %arg5[%c0_9, %c0_10, %c0_11] : memref<1x128x256xf32, #tpu.memory_space<vmem>>, vector<1x128x256xf32>
    %25 = vector.shape_cast %24 : vector<1x128x256xf32> to vector<128x256xf32>
    %26 = vector.shape_cast %23 : vector<128x256xf32> to vector<1x128x256xf32>
    tpu.vector_store %arg5[%c0_9, %c0_10, %c0_11], %26 {strides = array<i32>} : memref<1x128x256xf32, #tpu.memory_space<vmem>>, vector<1x128x256xf32>,
    %cst_12 = arith.constant 0.000000e+00 : f32
    %27 = vector.shape_cast %5 : vector<256x1xi1> to vector<256x1xi1>
    %28 = vector.broadcast %27 : vector<256x1xi1> to vector<256x128xi1>
    %29 = vector.broadcast %cst_12 : f32 to vector<256x128xf32>
    %30 = arith.select %28, %22, %29 : vector<256x128xi1>, vector<256x128xf32>
    %cst_13 = arith.constant dense<0.000000e+00> : vector<128xf32>
    %31 = vector.multi_reduction <add>, %30, %cst_13 [0] : vector<256x128xf32> to vector<128xf32>
    %32 = vector.shape_cast %31 : vector<128xf32> to vector<1x128xf32>
    %c0_14 = arith.constant 0 : index
    %c0_15 = arith.constant 0 : index
    %c0_16 = arith.constant 0 : index
    %c0_17 = arith.constant 0 : index
    %33 = vector.load %arg6[%c0_14, %c0_15, %c0_16, %c0_17] : memref<1x1x2x128xf32, #tpu.memory_space<vmem>>, vector<1x1x1x128xf32>
    %34 = vector.shape_cast %33 : vector<1x1x1x128xf32> to vector<1x128xf32>
    %35 = vector.shape_cast %32 : vector<1x128xf32> to vector<1x1x1x128xf32>
    tpu.vector_store %arg6[%c0_14, %c0_15, %c0_16, %c0_17], %35 {strides = array<i32>} : memref<1x1x2x128xf32, #tpu.memory_space<vmem>>, vector<1x1x1x128xf32>,
    %36 = arith.mulf %30, %22 : vector<256x128xf32>
    %cst_18 = arith.constant dense<0.000000e+00> : vector<128xf32>
    %37 = vector.multi_reduction <add>, %36, %cst_18 [0] : vector<256x128xf32> to vector<128xf32>
    %38 = vector.shape_cast %37 : vector<128xf32> to vector<1x128xf32>
    %c0_19 = arith.constant 0 : index
    %c0_20 = arith.constant 0 : index
    %c1 = arith.constant 1 : index
    %c0_21 = arith.constant 0 : index
    %39 = vector.load %arg6[%c0_19, %c0_20, %c1, %c0_21] : memref<1x1x2x128xf32, #tpu.memory_space<vmem>>, vector<1x1x1x128xf32>
    %40 = vector.shape_cast %39 : vector<1x1x1x128xf32> to vector<1x128xf32>
    %41 = vector.shape_cast %38 : vector<1x128xf32> to vector<1x1x1x128xf32>
    tpu.vector_store %arg6[%c0_19, %c0_20, %c1, %c0_21], %41 {strides = array<i32>} : memref<1x1x2x128xf32, #tpu.memory_space<vmem>>, vector<1x1x1x128xf32>,
    return
  }
  func.func @transform_0(%arg0: i32, %arg1: i32) -> (i32, i32, i32) {
    %c0_i32 = arith.constant 0 : i32
    %c0_i32_0 = arith.constant 0 : i32
    return %arg0, %arg1, %c0_i32 : i32, i32, i32
  }
  func.func @transform_1(%arg0: i32, %arg1: i32) -> (i32, i32) {
    %c0_i32 = arith.constant 0 : i32
    %c0_i32_0 = arith.constant 0 : i32
    %c0_i32_1 = arith.constant 0 : i32
    return %c0_i32, %c0_i32_0 : i32, i32
  }
  func.func @transform_2(%arg0: i32, %arg1: i32) -> (i32, i32) {
    %c0_i32 = arith.constant 0 : i32
    %c0_i32_0 = arith.constant 0 : i32
    %c0_i32_1 = arith.constant 0 : i32
    return %c0_i32, %c0_i32_0 : i32, i32
  }
  func.func @transform_3(%arg0: i32, %arg1: i32) -> (i32, i32, i32) {
    %c0_i32 = arith.constant 0 : i32
    %c0_i32_0 = arith.constant 0 : i32
    return %arg0, %c0_i32, %arg1 : i32, i32, i32
  }
  func.func @transform_4(%arg0: i32, %arg1: i32) -> (i32, i32, i32, i32) {
    %c0_i32 = arith.constant 0 : i32
    %c0_i32_0 = arith.constant 0 : i32
    %c0_i32_1 = arith.constant 0 : i32
    return %arg0, %arg1, %c0_i32, %c0_i32_0 : i32, i32, i32, i32
  }
}

module attributes {stable_mosaic.version = 11 : i64} {
  func.func @_bn_kernel(%arg0: i32, %arg1: i32, %arg2: memref<2xf32, #tpu.memory_space<smem>>, %arg3: memref<1x128x256xf32, #tpu.memory_space<vmem>>, %arg4: memref<1x128x256xf32, #tpu.memory_space<vmem>>) attributes {dimension_semantics = [#tpu.dimension_semantics<parallel>, #tpu.dimension_semantics<parallel>], iteration_bounds = array<i64: 2, 1>, scalar_prefetch = 0 : i64, scratch_operands = 0 : i64, tpu.core_type = #tpu.core_type<tc>, window_params = [{transform_indices = @transform_0, window_bounds = array<i64: 2>}, {transform_indices = @transform_1, window_bounds = array<i64: 1, 128, 256>}, {transform_indices = @transform_2, window_bounds = array<i64: 1, 128, 256>}]} {
    %c0 = arith.constant 0 : index
    %0 = memref.load %arg2[%c0] : memref<2xf32, #tpu.memory_space<smem>>
    %c1 = arith.constant 1 : index
    %1 = memref.load %arg2[%c1] : memref<2xf32, #tpu.memory_space<smem>>
    %c0_0 = arith.constant 0 : index
    %c0_1 = arith.constant 0 : index
    %c0_2 = arith.constant 0 : index
    %2 = vector.load %arg3[%c0_0, %c0_1, %c0_2] : memref<1x128x256xf32, #tpu.memory_space<vmem>>, vector<1x128x256xf32>
    %3 = vector.shape_cast %2 : vector<1x128x256xf32> to vector<128x256xf32>
    %4 = vector.broadcast %0 : f32 to vector<128x256xf32>
    %5 = arith.mulf %3, %4 : vector<128x256xf32>
    %6 = vector.broadcast %1 : f32 to vector<128x256xf32>
    %7 = arith.addf %5, %6 : vector<128x256xf32>
    %c0_3 = arith.constant 0 : index
    %c0_4 = arith.constant 0 : index
    %c0_5 = arith.constant 0 : index
    %8 = vector.load %arg4[%c0_3, %c0_4, %c0_5] : memref<1x128x256xf32, #tpu.memory_space<vmem>>, vector<1x128x256xf32>
    %9 = vector.shape_cast %8 : vector<1x128x256xf32> to vector<128x256xf32>
    %10 = vector.shape_cast %7 : vector<128x256xf32> to vector<1x128x256xf32>
    tpu.vector_store %arg4[%c0_3, %c0_4, %c0_5], %10 {strides = array<i32>} : memref<1x128x256xf32, #tpu.memory_space<vmem>>, vector<1x128x256xf32>,
    return
  }
  func.func @transform_0(%arg0: i32, %arg1: i32) -> i32 {
    %c0_i32 = arith.constant 0 : i32
    %c0_i32_0 = arith.constant 0 : i32
    return %c0_i32 : i32
  }
  func.func @transform_1(%arg0: i32, %arg1: i32) -> (i32, i32, i32) {
    %c0_i32 = arith.constant 0 : i32
    %c0_i32_0 = arith.constant 0 : i32
    return %arg0, %c0_i32, %arg1 : i32, i32, i32
  }
  func.func @transform_2(%arg0: i32, %arg1: i32) -> (i32, i32, i32) {
    %c0_i32 = arith.constant 0 : i32
    %c0_i32_0 = arith.constant 0 : i32
    return %arg0, %c0_i32, %arg1 : i32, i32, i32
  }
}

</mosaic_0001>

<bundles_post_ra>
// kernel: reverse
= control target key start
LH: loop header
LB: loop body
LE: loop exit
PB: predicated region body
PF: predicated region fallthrough
CT: control target
= control target key end

     0   :  { %v2_v0 = vlaneseq  ;;  %s305_s0 = inlined_call_operand.vmem [shape: bf16[2,256], index: 0, kind: input, shape index: {}]   ;;  %s306_s1 = inlined_call_operand.vmem [shape: bf16[2,256], index: 1, kind: output, shape index: {}]  }
   0x2   :  { %v3_v1 = vsub.s32 127, %v2_v0 }
   0x4   :  { %4 = vset.pattern.permute.xlu0 %v3_v1 }
   0x5   :  { %s265_s6 = smov 0   ;;  %s267_s7 = smov 0  }
   0x6   :  { %s269_s8 = smov 0  }
   0x7 LB: > { %s199_s9 = sadd.s32 4294967295, %s252_s8   ;;  %s19_s10 = sadd.s32 1, %s248_s7  ;;  %s252_s8 = sphi %s269_s8, %s10_s8   ;;  %s248_s7 = sphi %s267_s7, %s308_s7   ;;  %s244_s6 = sphi %s265_s6, %s307_s6  }
   0x8   : > { %p20_p0 = scmp.ge.s32.totalorder %s19_s10, 2  ;;  %p201_p1 = scmp.ge.s32.totalorder %s252_s8, 2 }
   0x9   : > { %s38_s11 = sand.u32 (!%p201_p1), 1, %s252_s8   ;;  %s40_s12 = ssub.s32 (!%p201_p1), 1, %s248_s7 }
   0xa   : > { %s310_s10 = smov (%p20_p0, %s19_s10), 0  ;;  %36 = sbr.rel (%p201_p1) target bundleno = 17 (0x11), region = 16 }
   0xb   : > { %s43_s15 = scalar_lea.vmem (!%p201_p1), %s305_s0, %s40_s12  ;;  %s39_s16 = scalar_lea.vmem (!%p201_p1), [#allocation1], %s38_s11 }
   0xc   : > { %v59_v2 = vld [vmem:[%s43_s15] sm:$0x1] (!%p201_p1) }
   0xd   : > { %60 = vst [vmem:[%s39_s16] sm:$0x1] (!%p201_p1), %v59_v2 }
  0x11 PF: > { %p202_p2 = scmp.ge.s32.totalorder %s252_s8, 1  ;;  %p76_p3 = scmp.lt.s32.totalorder %s252_s8, 3 }
  0x13   : > { %p77_p4 = pnand %p202_p2, %p76_p3 }
  0x14   : > { %s86_s17 = sand.u32 (!%p77_p4), 1, %s199_s9   ;;  %v254_v8 = vmov (!%p77_p4), 0.0   ;;  %s125_s22 = scalar_lea.vmem (!%p77_p4), %s306_s1, %s244_s6 }
  0x15   : > { %80 = sbr.rel (%p77_p4) target bundleno = 180 (0xb4), region = 50  ;;  %s87_s18 = scalar_lea.vmem (!%p77_p4), [#allocation1], %s86_s17 }
  0x16   : > { %v103_v3 = vld [vmem:[%s87_s18] sm:$0x1] (!%p77_p4)  ;;  %s90_s19 = scalar_lea.vmem (!%p77_p4), [#allocation3], %s86_s17 }
  0x17   : > { %v104_v4 = vunpack.c.l.bf16 (!%p77_p4), %v103_v3 }
  0x19   : > { %106 = vst [vmem:[#allocation0] sm:$0x3] (!%p77_p4), %v104_v4 }
  0x20   : > { %v108_v5 = vld [vmem:[#allocation0] sm:$0xff] }
  0x21   : > { %109 = vperm.xlu0 %4, %v108_v5  }
  0xa0   : > { %v110_v6 = vpop.permute.xlu0 %109 }
  0xa1   : > { %111 = vst [vmem:[#allocation2] sm:$0xff] %v110_v6 }
  0xa8   : > { %v116_v7 = vld [vmem:[#allocation2] sm:$0x3] }
  0xa9   : > { %v117_v9 = vpack.c.bf16 %v254_v8, %v116_v7 }
  0xab   : > { %119 = vst [vmem:[%s90_s19] sm:$0x1] %v117_v9 }
  0xb2   : > { %v141_v10 = vld [vmem:[%s90_s19] sm:$0x1] }
  0xb3   : > { %142 = vst [vmem:[%s125_s22] sm:$0x1] %v141_v10 }
  0xb4 PF: > { %s10_s8 = sadd.s32 1, %s252_s8   ;;  %s307_s6 = smov %s248_s7 }
  0xb5   : > { %p7_p5 = scmp.ge.s32.totalorder %s10_s8, 4   ;;  %s308_s7 = smov %s310_s10 }
  0xb7   :  { %9 = sbr.rel (!%p7_p5) target bundleno = 7 (0x7), region = 110 }

// kernel: spectrogram_forward.3
= control target key start
LH: loop header
LB: loop body
LE: loop exit
PB: predicated region body
PF: predicated region fallthrough
CT: control target
= control target key end

     0   :  { %7 = vsyncpa [#allocation3], 0  ;;  %s538_s9 = smov 0   ;;  %s540_s10 = smov 0   ;;  %s740_s0 = inlined_call_operand.vmem [shape: f32[2], index: 0, kind: input, shape index: {}]   ;;  %s741_s1 = inlined_call_operand.vmem [shape: f32[2,128,256], index: 1, kind: input, shape index: {}, may-alias: {1,2}]   ;;  %s742_s2 = inlined_call_operand.vmem [shape: f32[2,128,256], index: 2, kind: output, shape index: {}, may-alias: {1,2}]  }
   0x1   :  { %s542_s11 = smov 0  }
   0x2 LB: > { %s428_s12 = sadd.s32 4294967295, %s520_s11   ;;  %s25_s13 = sadd.s32 1, %s516_s10  ;;  %s520_s11 = sphi %s542_s11, %s13_s11   ;;  %s516_s10 = sphi %s540_s10, %s746_s10   ;;  %s512_s9 = sphi %s538_s9, %s745_s9  }
   0x3   : > { %p27_p0 = scmp.ge.s32.totalorder %s25_s13, 2  ;;  %p430_p1 = scmp.ge.s32.totalorder %s520_s11, 1 }
   0x4   : > { %p107_p2 = scmp.lt.s32.totalorder %s520_s11, 3  ;;  %p563_p4 = scmp.eq.s32.totalorder %s428_s12, 0 }
   0x5   : > { %s748_s13 = smov (%p27_p0, %s25_s13), 0  ;;  %s120_s18 = sshll.u32 %s740_s0, 4  ;;  %s121_s18 = int_to_ptr.vmem [resolvable:$true] %s120_s18 }
   0x6   : > { %p559_p3 = pnand %p430_p1, %p107_p2  ;;  %s479_s19 = scalar_lea.vmem %s121_s18, 16 }
   0x7   : > { %p480_p7 = scmp.ne.s32.totalorder %s121_s18, %s479_s19  ;;  %p487_p11 = scmp.lt.s32.totalorder %s121_s18, %s121_s18 }
   0x8   : > { %p448_p5 = pneg %p559_p3  ;;  %p488_p12 = scmp.lt.s32.totalorder %s479_s19, %s479_s19 }
   0xa   : > { %p449_p6 = pnand %p563_p4, %p448_p5  ;;  %p489_p13 = por %p488_p12, %p487_p11 }
   0xc   : > { %p481_p8 = pneg %p449_p6 }
   0xe   : > { %p482_p9 = pnand %p481_p8, %p480_p7 }
  0x10   : > { %p483_p10 = pneg %p482_p9 }
  0x12   : > { %p490_p0 = pnand %p489_p13, %p483_p10 }
  0x14   : > { %493 = shalt.err (!%p490_p0)
}
  0x15   : > { %s522_s20 = smov [#allocation2]   ;;  %146 = sbr.rel (%p559_p3) target bundleno = 63 (0x3f), region = 28 }
  0x16   : > { %451 = dma.vmem_to_smem (!%p449_p6), %s121_s18, 16, %s522_s20, [#allocation3]  }
  0x1c   : > { %507 = dma.done.wait (%p563_p4), [#allocation3], 16  }
  0x1d   : > { %509 = vsyncadd (%p563_p4), [#allocation3], 4294967280 }
  0x1e   : > { %152 = sfence }
  0x1f   : > { %p178_p1 = scmp.lt.s32.totalorder %s512_s9, 1  ;;  %s197_s21 = sld [smem:[#allocation2]] }
  0x20   : > { %s439_s22 = sld [smem:[#allocation2 + $0x1]] }
  0x21   : > { %s750_s9 = smov (!%p178_p1, %s512_s9), 1 }
  0x22   : > { %s442_s23 = sshll.u32 %s750_s9, 8 }
  0x23   : > { %s590_s26 = scalar_lea.vmem %s741_s1, %s442_s23  ;;  %s650_s29 = scalar_lea.vmem %s742_s2, %s442_s23 }
  0x24   : > { %v199_v0 = vld [vmem:[%s590_s26] sm:$0xff]  ;;  %v200_v1 = vld [vmem:[%s590_s26 + $0x8] sm:$0xff]  ;;  %v201_v2 = vld [vmem:[%s590_s26 + $0x10] sm:$0xff] }
  0x25   : > { %v595_v3 = vstv %s197_s21  ;;  %v202_v4 = vld [vmem:[%s590_s26 + $0x18] sm:$0xff]  ;;  %v203_v5 = vld [vmem:[%s590_s26 + $0x20] sm:$0xff]  ;;  %v204_v6 = vld [vmem:[%s590_s26 + $0x28] sm:$0xff] }
  0x26   : > { %v232_v7 = vmul.f32 %v595_v3, %v199_v0  ;;  %v601_v8 = vstv %s439_s22  ;;  %v233_v9 = vmul.f32 %v595_v3, %v200_v1  ;;  %v234_v10 = vmul.f32 %v595_v3, %v201_v2  ;;  %v205_v11 = vld [vmem:[%s590_s26 + $0x30] sm:$0xff]  ;;  %v206_v12 = vld [vmem:[%s590_s26 + $0x38] sm:$0xff]  ;;  %v207_v13 = vld [vmem:[%s590_s26 + $0x40] sm:$0xff] }
  0x27   : > { %v235_v14 = vmul.f32 %v595_v3, %v202_v4  ;;  %v236_v15 = vmul.f32 %v595_v3, %v203_v5  ;;  %v237_v16 = vmul.f32 %v595_v3, %v204_v6  ;;  %v208_v17 = vld [vmem:[%s590_s26 + $0x48] sm:$0xff]  ;;  %v209_v18 = vld [vmem:[%s590_s26 + $0x50] sm:$0xff]  ;;  %v210_v19 = vld [vmem:[%s590_s26 + $0x58] sm:$0xff]  ;;  %v238_v23 = vmul.f32 %v595_v3, %v205_v11 }
  0x28   : > { %v265_v20 = vadd.f32 %v601_v8, %v232_v7  ;;  %v266_v21 = vadd.f32 %v601_v8, %v233_v9  ;;  %v267_v22 = vadd.f32 %v601_v8, %v234_v10  ;;  %v211_v24 = vld [vmem:[%s590_s26 + $0x60] sm:$0xff]  ;;  %v212_v25 = vld [vmem:[%s590_s26 + $0x68] sm:$0xff]  ;;  %v213_v26 = vld [vmem:[%s590_s26 + $0x70] sm:$0xff]  ;;  %v239_v30 = vmul.f32 %v595_v3, %v206_v12 }
  0x29   : > { %v268_v27 = vadd.f32 %v601_v8, %v235_v14  ;;  %v269_v28 = vadd.f32 %v601_v8, %v236_v15  ;;  %v270_v29 = vadd.f32 %v601_v8, %v237_v16  ;;  %v214_v31 = vld [vmem:[%s590_s26 + $0x78] sm:$0xff]  ;;  %v215_v32 = vld [vmem:[%s590_s26 + $0x80] sm:$0xff]  ;;  %v271_v33 = vadd.f32 %v601_v8, %v238_v23  ;;  %v216_v37 = vld [vmem:[%s590_s26 + $0x88] sm:$0xff] }
  0x2a   : > { %v240_v34 = vmul.f32 %v595_v3, %v207_v13  ;;  %v241_v35 = vmul.f32 %v595_v3, %v208_v17  ;;  %v242_v36 = vmul.f32 %v595_v3, %v209_v18  ;;  %v217_v38 = vld [vmem:[%s590_s26 + $0x90] sm:$0xff]  ;;  %v218_v39 = vld [vmem:[%s590_s26 + $0x98] sm:$0xff]  ;;  %v272_v40 = vadd.f32 %v601_v8, %v239_v30  ;;  %v219_v44 = vld [vmem:[%s590_s26 + $0xa0] sm:$0xff] }
  0x2b   : > { %v243_v41 = vmul.f32 %v595_v3, %v210_v19  ;;  %v244_v42 = vmul.f32 %v595_v3, %v211_v24  ;;  %v245_v43 = vmul.f32 %v595_v3, %v212_v25  ;;  %v220_v45 = vld [vmem:[%s590_s26 + $0xa8] sm:$0xff]  ;;  %v221_v46 = vld [vmem:[%s590_s26 + $0xb0] sm:$0xff]  ;;  %v246_v50 = vmul.f32 %v595_v3, %v213_v26  ;;  %v222_v51 = vld [vmem:[%s590_s26 + $0xb8] sm:$0xff] }
  0x2c   : > { %v273_v47 = vadd.f32 %v601_v8, %v240_v34  ;;  %v274_v48 = vadd.f32 %v601_v8, %v241_v35  ;;  %v275_v49 = vadd.f32 %v601_v8, %v242_v36  ;;  %v223_v52 = vld [vmem:[%s590_s26 + $0xc0] sm:$0xff]  ;;  %v224_v53 = vld [vmem:[%s590_s26 + $0xc8] sm:$0xff]  ;;  %v247_v57 = vmul.f32 %v595_v3, %v214_v31  ;;  %v225_v58 = vld [vmem:[%s590_s26 + $0xd0] sm:$0xff] }
  0x2d   : > { %v276_v54 = vadd.f32 %v601_v8, %v243_v41  ;;  %v277_v55 = vadd.f32 %v601_v8, %v244_v42  ;;  %v278_v56 = vadd.f32 %v601_v8, %v245_v43  ;;  %v226_v59 = vld [vmem:[%s590_s26 + $0xd8] sm:$0xff]  ;;  %v227_v60 = vld [vmem:[%s590_s26 + $0xe0] sm:$0xff]  ;;  %v279_v61 = vadd.f32 %v601_v8, %v246_v50  ;;  %v228_v1 = vld [vmem:[%s590_s26 + $0xe8] sm:$0xff] }
  0x2e   : > { %v248_v62 = vmul.f32 %v595_v3, %v215_v32  ;;  %v249_v63 = vmul.f32 %v595_v3, %v216_v37  ;;  %v250_v0 = vmul.f32 %v595_v3, %v217_v38  ;;  %v229_v2 = vld [vmem:[%s590_s26 + $0xf0] sm:$0xff]  ;;  %v230_v4 = vld [vmem:[%s590_s26 + $0xf8] sm:$0xff]  ;;  %v280_v5 = vadd.f32 %v601_v8, %v247_v57 }
  0x2f   : > { %v251_v6 = vmul.f32 %v595_v3, %v218_v39  ;;  %v252_v7 = vmul.f32 %v595_v3, %v219_v44  ;;  %v253_v9 = vmul.f32 %v595_v3, %v220_v45  ;;  %297 = vst [vmem:[%s650_s29] sm:$0xff] %v265_v20  ;;  %298 = vst [vmem:[%s650_s29 + $0x8] sm:$0xff] %v266_v21 }
  0x30   : > { %299 = vst [vmem:[%s650_s29 + $0x10] sm:$0xff] %v267_v22  ;;  %300 = vst [vmem:[%s650_s29 + $0x18] sm:$0xff] %v268_v27  ;;  %v281_v10 = vadd.f32 %v601_v8, %v248_v62  ;;  %v282_v11 = vadd.f32 %v601_v8, %v249_v63  ;;  %v283_v12 = vadd.f32 %v601_v8, %v250_v0 }
  0x31   : > { %301 = vst [vmem:[%s650_s29 + $0x20] sm:$0xff] %v269_v28  ;;  %302 = vst [vmem:[%s650_s29 + $0x28] sm:$0xff] %v270_v29  ;;  %v254_v13 = vmul.f32 %v595_v3, %v221_v46  ;;  %v284_v14 = vadd.f32 %v601_v8, %v251_v6  ;;  %v285_v15 = vadd.f32 %v601_v8, %v252_v7 }
  0x32   : > { %303 = vst [vmem:[%s650_s29 + $0x30] sm:$0xff] %v271_v33  ;;  %304 = vst [vmem:[%s650_s29 + $0x38] sm:$0xff] %v272_v40  ;;  %v286_v16 = vadd.f32 %v601_v8, %v253_v9  ;;  %v255_v17 = vmul.f32 %v595_v3, %v222_v51  ;;  %v256_v19 = vmul.f32 %v595_v3, %v223_v52 }
  0x33   : > { %305 = vst [vmem:[%s650_s29 + $0x40] sm:$0xff] %v273_v47  ;;  %306 = vst [vmem:[%s650_s29 + $0x48] sm:$0xff] %v274_v48  ;;  %v287_v18 = vadd.f32 %v601_v8, %v254_v13  ;;  %v257_v20 = vmul.f32 %v595_v3, %v224_v53  ;;  %v258_v21 = vmul.f32 %v595_v3, %v225_v58 }
  0x34   : > { %307 = vst [vmem:[%s650_s29 + $0x50] sm:$0xff] %v275_v49  ;;  %308 = vst [vmem:[%s650_s29 + $0x58] sm:$0xff] %v276_v54  ;;  %v288_v22 = vadd.f32 %v601_v8, %v255_v17  ;;  %v259_v23 = vmul.f32 %v595_v3, %v226_v59  ;;  %v260_v24 = vmul.f32 %v595_v3, %v227_v60 }
  0x35   : > { %309 = vst [vmem:[%s650_s29 + $0x60] sm:$0xff] %v277_v55  ;;  %310 = vst [vmem:[%s650_s29 + $0x68] sm:$0xff] %v278_v56  ;;  %v261_v25 = vmul.f32 %v595_v3, %v228_v1  ;;  %v289_v26 = vadd.f32 %v601_v8, %v256_v19  ;;  %v290_v27 = vadd.f32 %v601_v8, %v257_v20 }
  0x36   : > { %311 = vst [vmem:[%s650_s29 + $0x70] sm:$0xff] %v279_v61  ;;  %312 = vst [vmem:[%s650_s29 + $0x78] sm:$0xff] %v280_v5  ;;  %v291_v28 = vadd.f32 %v601_v8, %v258_v21  ;;  %v262_v29 = vmul.f32 %v595_v3, %v229_v2  ;;  %v292_v30 = vadd.f32 %v601_v8, %v259_v23 }
  0x37   : > { %313 = vst [vmem:[%s650_s29 + $0x80] sm:$0xff] %v281_v10  ;;  %314 = vst [vmem:[%s650_s29 + $0x88] sm:$0xff] %v282_v11  ;;  %v293_v31 = vadd.f32 %v601_v8, %v260_v24  ;;  %v294_v32 = vadd.f32 %v601_v8, %v261_v25  ;;  %v263_v33 = vmul.f32 %v595_v3, %v230_v4 }
  0x38   : > { %315 = vst [vmem:[%s650_s29 + $0x90] sm:$0xff] %v283_v12  ;;  %316 = vst [vmem:[%s650_s29 + $0x98] sm:$0xff] %v284_v14  ;;  %v295_v34 = vadd.f32 %v601_v8, %v262_v29 }
  0x39   : > { %317 = vst [vmem:[%s650_s29 + $0xa0] sm:$0xff] %v285_v15  ;;  %318 = vst [vmem:[%s650_s29 + $0xa8] sm:$0xff] %v286_v16  ;;  %v296_v35 = vadd.f32 %v601_v8, %v263_v33 }
  0x3a   : > { %319 = vst [vmem:[%s650_s29 + $0xb0] sm:$0xff] %v287_v18  ;;  %320 = vst [vmem:[%s650_s29 + $0xb8] sm:$0xff] %v288_v22 }
  0x3b   : > { %321 = vst [vmem:[%s650_s29 + $0xc0] sm:$0xff] %v289_v26  ;;  %322 = vst [vmem:[%s650_s29 + $0xc8] sm:$0xff] %v290_v27 }
  0x3c   : > { %323 = vst [vmem:[%s650_s29 + $0xd0] sm:$0xff] %v291_v28  ;;  %324 = vst [vmem:[%s650_s29 + $0xd8] sm:$0xff] %v292_v30 }
  0x3d   : > { %325 = vst [vmem:[%s650_s29 + $0xe0] sm:$0xff] %v293_v31  ;;  %326 = vst [vmem:[%s650_s29 + $0xe8] sm:$0xff] %v294_v32 }
  0x3e   : > { %327 = vst [vmem:[%s650_s29 + $0xf0] sm:$0xff] %v295_v34  ;;  %328 = vst [vmem:[%s650_s29 + $0xf8] sm:$0xff] %v296_v35 }
  0x3f PF: > { %s13_s11 = sadd.s32 1, %s520_s11   ;;  %s745_s9 = smov %s516_s10 }
  0x40   : > { %p10_p2 = scmp.ge.s32.totalorder %s13_s11, 4   ;;  %s746_s10 = smov %s748_s13 }
  0x42   :  { %12 = sbr.rel (!%p10_p2) target bundleno = 2 (0x2), region = 63 }
  0x49   :  { %359 = vsyncpa [#allocation3], 1 }
  0x4a   :  { %361 = vsyncpa [#allocation3 + $0x1], 1 }

// kernel: spectrogram_forward.2
= control target key start
LH: loop header
LB: loop body
LE: loop exit
PB: predicated region body
PF: predicated region fallthrough
CT: control target
= control target key end

     0   :  { %s4104_s15 = smov 0   ;;  %s4106_s16 = smov 0   ;;  %s5158_s0 = inlined_call_operand.vmem [shape: bf16[2,256,400], index: 0, kind: input, shape index: {}]   ;;  %s5159_s1 = inlined_call_operand.vmem [shape: bf16[400,512], index: 1, kind: input, shape index: {}]   ;;  %s5160_s2 = inlined_call_operand.vmem [shape: bf16[256,128], index: 2, kind: input, shape index: {}]   ;;  %s5161_s3 = inlined_call_operand.vmem [shape: f32[2,128,256], index: 3, kind: output, shape index: {0}]   ;;  %s5162_s4 = inlined_call_operand.vmem [shape: f32[2,1,2,128], index: 4, kind: output, shape index: {1}]  }
   0x1   :  { %s4108_s17 = smov 0  }
   0x2 LB: > { %s27_s18 = sadd.s32 1, %s4073_s16  ;;  %p3224_p0 = scmp.ge.s32.totalorder %s4077_s17, 1  ;;  %s4077_s17 = sphi %s4108_s17, %s15_s17   ;;  %s4073_s16 = sphi %s4106_s16, %s5202_s16   ;;  %s4069_s15 = sphi %s4104_s15, %s5201_s15  }
   0x3   : > { %p29_p1 = scmp.ge.s32.totalorder %s27_s18, 2  ;;  %p189_p2 = scmp.lt.s32.totalorder %s4077_s17, 3 }
   0x5   : > { %s5204_s18 = smov (%p29_p1, %s27_s18), 0  ;;  %p190_p3 = pnand %p3224_p0, %p189_p2 }
   0x7   : > { %193 = sbr.rel (%p190_p3) target bundleno = 960 (0x3c0), region = 32 }
   0xe   : > { %v3728_v0 = vld [vmem:[%s5159_s1 + $0x4] ss:$16 sps:$4 sm:$0xff]   ;;  %v3732_v2 = vld [vmem:[%s5159_s1] ss:$16 sps:$4 sm:$0xff]   ;;  %p232_p4 = scmp.lt.s32.totalorder %s4069_s15, 1  ;;  %vm1327_vm0 = vcmask 130048  }
   0xf   : > { %v4130_v1 = vld [vmem:[%s5159_s1 + $0x204] ss:$16 sps:$4 sm:$0xff]   ;;  %1376 = vmatprep.subr.bf16.mxu0 %v3728_v0  ;;  %v4138_v3 = vld [vmem:[%s5159_s1 + $0x200] ss:$16 sps:$4 sm:$0xff]   ;;  %v3789_v38 = vld [vmem:[%s5159_s1 + $0xc] ss:$16 sps:$4 sm:$0xff]  }
  0x10   : > { %3558 = vmatprep.subr.bf16.mxu1 %v4130_v1  ;;  %v3734_v4 = vld [vmem:[%s5159_s1 + $0x24] ss:$16 sps:$4 sm:$0xff]   ;;  %1377 = vmatpush1.bf16.msra.mxu0 %v3732_v2  ;;  %v3738_v6 = vld [vmem:[%s5159_s1 + $0x20] ss:$16 sps:$4 sm:$0xff]   ;;  %s5206_s15 = smov (!%p232_p4, %s4069_s15), 1 }
  0x11   : > { %3567 = vmatpush1.bf16.msra.mxu1 %v4138_v3  ;;  %v4148_v5 = vld [vmem:[%s5159_s1 + $0x224] ss:$16 sps:$4 sm:$0xff]   ;;  %1378 = vmatprep.subr.bf16.mxu0 %v3734_v4  ;;  %v4156_v7 = vld [vmem:[%s5159_s1 + $0x220] ss:$16 sps:$4 sm:$0xff]   ;;  %s3444_s21 = sshll.u32 %s5206_s15, 9  ;;  %s3229_s20 = sshll.u32 %s5206_s15, 1 }
  0x12   : > { %3559 = vmatprep.subr.bf16.mxu1 %v4148_v5  ;;  %v3740_v8 = vld [vmem:[%s5159_s1 + $0x44] ss:$16 sps:$4 sm:$0xff]   ;;  %v3744_v10 = vld [vmem:[%s5159_s1 + $0x40] ss:$16 sps:$4 sm:$0xff]   ;;  %s4247_s30 = scalar_lea.vmem %s5158_s0, %s3444_s21  ;;  %v3787_v40 = vld [vmem:[%s5159_s1 + $0x8] ss:$16 sps:$4 sm:$0xff]   ;;  %s5107_s22 = scalar_lea.vmem %s5162_s4, %s3229_s20 }
  0x13   : > { %v4165_v9 = vld [vmem:[%s5159_s1 + $0x244] ss:$16 sps:$4 sm:$0xff]   ;;  %v4173_v11 = vld [vmem:[%s5159_s1 + $0x240] ss:$16 sps:$4 sm:$0xff]   ;;  %v3784_v30 = vld [vmem:[%s4247_s30 + $0xec] ss:$16 sps:$4 sm:$0xff]  }
  0x14   : > { %1379 = vmatpush1.bf16.msra.mxu0 %v3738_v6  ;;  %v3746_v12 = vld [vmem:[%s5159_s1 + $0x64] ss:$16 sps:$4 sm:$0xff]   ;;  %v3750_v14 = vld [vmem:[%s5159_s1 + $0x60] ss:$16 sps:$4 sm:$0xff]   ;;  %3401 = vmatprep.mubr.msk.bf16.mxu1 %vm1327_vm0, %v3784_v30  ;;  %v4304_v39 = vld [vmem:[%s4247_s30 + $0xe8] ss:$16 sps:$4 sm:$0xff]  }
  0x15   : > { %3568 = vmatpush1.bf16.msra.mxu1 %v4156_v7  ;;  %1380 = vmatprep.subr.bf16.mxu0 %v3740_v8  ;;  %v4183_v13 = vld [vmem:[%s5159_s1 + $0x264] ss:$16 sps:$4 sm:$0xff]   ;;  %v4193_v15 = vld [vmem:[%s5159_s1 + $0x260] ss:$16 sps:$4 sm:$0xff]   ;;  %v3796_v43 = vld [vmem:[%s5159_s1 + $0x2c] ss:$16 sps:$4 sm:$0xff]  }
  0x16   : > { %3560 = vmatprep.subr.bf16.mxu1 %v4165_v9  ;;  %v3752_v16 = vld [vmem:[%s5159_s1 + $0x84] ss:$16 sps:$4 sm:$0xff]   ;;  %v3756_v18 = vld [vmem:[%s5159_s1 + $0x80] ss:$16 sps:$4 sm:$0xff]   ;;  %v4320_v44 = vld [vmem:[%s4247_s30 + $0x10c] ss:$16 sps:$4 sm:$0xff]  }
  0x17   : > { %v4202_v17 = vld [vmem:[%s5159_s1 + $0x284] ss:$16 sps:$4 sm:$0xff]   ;;  %v4210_v19 = vld [vmem:[%s5159_s1 + $0x280] ss:$16 sps:$4 sm:$0xff]   ;;  %v3794_v46 = vld [vmem:[%s5159_s1 + $0x28] ss:$16 sps:$4 sm:$0xff]  }
  0x18   : > { %1381 = vmatpush1.bf16.msra.mxu0 %v3744_v10  ;;  %v3758_v20 = vld [vmem:[%s5159_s1 + $0xa4] ss:$16 sps:$4 sm:$0xff]   ;;  %v3762_v22 = vld [vmem:[%s5159_s1 + $0xa0] ss:$16 sps:$4 sm:$0xff]   ;;  %v3805_v48 = vld [vmem:[%s5159_s1 + $0x4c] ss:$16 sps:$4 sm:$0xff]  }
  0x19   : > { %3569 = vmatpush1.bf16.msra.mxu1 %v4173_v11  ;;  %1382 = vmatprep.subr.bf16.mxu0 %v3746_v12  ;;  %v4223_v21 = vld [vmem:[%s5159_s1 + $0x2a4] ss:$16 sps:$4 sm:$0xff]   ;;  %v4233_v23 = vld [vmem:[%s5159_s1 + $0x2a0] ss:$16 sps:$4 sm:$0xff]   ;;  %v4338_v49 = vld [vmem:[%s4247_s30 + $0x108] ss:$16 sps:$4 sm:$0xff]  }
  0x1a   : > { %3561 = vmatprep.subr.bf16.mxu1 %v4183_v13  ;;  %v3764_v24 = vld [vmem:[%s5159_s1 + $0xc4] ss:$16 sps:$4 sm:$0xff]   ;;  %v3768_v26 = vld [vmem:[%s5159_s1 + $0xc0] ss:$16 sps:$4 sm:$0xff]   ;;  %v3803_v51 = vld [vmem:[%s5159_s1 + $0x48] ss:$16 sps:$4 sm:$0xff]  }
  0x1b   : > { %v4242_v25 = vld [vmem:[%s5159_s1 + $0x2c4] ss:$16 sps:$4 sm:$0xff]   ;;  %v4255_v27 = vld [vmem:[%s5159_s1 + $0x2c0] ss:$16 sps:$4 sm:$0xff]   ;;  %v3811_v53 = vld [vmem:[%s5159_s1 + $0x6c] ss:$16 sps:$4 sm:$0xff]  }
  0x1c   : > { %1383 = vmatpush1.bf16.msra.mxu0 %v3750_v14  ;;  %v3770_v28 = vld [vmem:[%s5159_s1 + $0xe4] ss:$16 sps:$4 sm:$0xff]   ;;  %v3774_v31 = vld [vmem:[%s5159_s1 + $0xe0] ss:$16 sps:$4 sm:$0xff]   ;;  %v4356_v55 = vld [vmem:[%s4247_s30 + $0x12c] ss:$16 sps:$4 sm:$0xff]  }
  0x1d   : > { %3570 = vmatpush1.bf16.msra.mxu1 %v4193_v15  ;;  %1384 = vmatprep.subr.bf16.mxu0 %v3752_v16  ;;  %v4264_v29 = vld [vmem:[%s5159_s1 + $0x2e4] ss:$16 sps:$4 sm:$0xff]   ;;  %v4274_v32 = vld [vmem:[%s5159_s1 + $0x2e0] ss:$16 sps:$4 sm:$0xff]   ;;  %v3809_v56 = vld [vmem:[%s5159_s1 + $0x68] ss:$16 sps:$4 sm:$0xff]  }
  0x1e   : > { %3562 = vmatprep.subr.bf16.mxu1 %v4202_v17  ;;  %v3776_v33 = vld [vmem:[%s5159_s1 + $0x104] ss:$16 sps:$4 sm:$0xff]   ;;  %v3780_v35 = vld [vmem:[%s5159_s1 + $0x100] ss:$16 sps:$4 sm:$0xff]   ;;  %v3820_v59 = vld [vmem:[%s5159_s1 + $0x8c] ss:$16 sps:$4 sm:$0xff]  }
  0x1f   : > { %v4285_v34 = vld [vmem:[%s5159_s1 + $0x304] ss:$16 sps:$4 sm:$0xff]   ;;  %v4294_v36 = vld [vmem:[%s5159_s1 + $0x300] ss:$16 sps:$4 sm:$0xff]   ;;  %v4374_v60 = vld [vmem:[%s4247_s30 + $0x128] ss:$16 sps:$4 sm:$0xff]  }
  0x20   : > { %1385 = vmatpush1.bf16.msra.mxu0 %v3756_v18  ;;  %v3785_v37 = vld [vmem:[%s5159_s1 + $0x124] ss:$16 sps:$4 sm:$0xff]   ;;  %v3790_v41 = vld [vmem:[%s5159_s1 + $0x120] ss:$16 sps:$4 sm:$0xff]   ;;  %v3818_v62 = vld [vmem:[%s5159_s1 + $0x88] ss:$16 sps:$4 sm:$0xff]  }
  0x21   : > { %3571 = vmatpush1.bf16.msra.mxu1 %v4210_v19  ;;  %1386 = vmatprep.subr.bf16.mxu0 %v3758_v20  ;;  %v3791_v42 = vld [vmem:[%s5159_s1 + $0x144] ss:$16 sps:$4 sm:$0xff]   ;;  %v3793_v45 = vld [vmem:[%s5159_s1 + $0x140] ss:$16 sps:$4 sm:$0xff]   ;;  %v4387_v0 = vld [vmem:[%s4247_s30 + $0x14c] ss:$16 sps:$4 sm:$0xff]  }
  0x22   : > { %3563 = vmatprep.subr.bf16.mxu1 %v4223_v21  ;;  %v3799_v47 = vld [vmem:[%s5159_s1 + $0x164] ss:$16 sps:$4 sm:$0xff]   ;;  %v3802_v50 = vld [vmem:[%s5159_s1 + $0x160] ss:$16 sps:$4 sm:$0xff]   ;;  %v3828_v2 = vld [vmem:[%s5159_s1 + $0xac] ss:$16 sps:$4 sm:$0xff]  }
  0x23   : > { %v3806_v52 = vld [vmem:[%s5159_s1 + $0x184] ss:$16 sps:$4 sm:$0xff]   ;;  %v3808_v54 = vld [vmem:[%s5159_s1 + $0x180] ss:$16 sps:$4 sm:$0xff]   ;;  %v3826_v6 = vld [vmem:[%s5159_s1 + $0xa8] ss:$16 sps:$4 sm:$0xff]  }
  0x24   : > { %1387 = vmatpush1.bf16.msra.mxu0 %v3762_v22  ;;  %v4363_v57 = vld [vmem:[%s4247_s30 + $0x4] ss:$16 sps:$4 sm:$0xff]   ;;  %v3817_v61 = vld [vmem:[%s5159_s1 + $0x1a0] ss:$16 sps:$4 sm:$0xff]   ;;  %v3838_v10 = vld [vmem:[%s5159_s1 + $0xcc] ss:$16 sps:$4 sm:$0xff]  }
  0x25   : > { %3572 = vmatpush1.bf16.msra.mxu1 %v4233_v23  ;;  %1388 = vmatprep.subr.bf16.mxu0 %v3764_v24  ;;  %v3814_v58 = vld [vmem:[%s5159_s1 + $0x1a4] ss:$16 sps:$4 sm:$0xff]   ;;  %v3823_v4 = vld [vmem:[%s5159_s1 + $0x1c0] ss:$16 sps:$4 sm:$0xff]   ;;  %v4408_v12 = vld [vmem:[%s4247_s30 + $0x148] ss:$16 sps:$4 sm:$0xff]  }
  0x26   : > { %3564 = vmatprep.subr.bf16.mxu1 %v4242_v25  ;;  %1408 = vmatprep.mubr.bf16.mxu0 %v4363_v57  ;;  %v3821_v63 = vld [vmem:[%s5159_s1 + $0x1c4] ss:$16 sps:$4 sm:$0xff]   ;;  %v3832_v14 = vld [vmem:[%s5159_s1 + $0x1e0] ss:$16 sps:$4 sm:$0xff]   ;;  %v3836_v16 = vld [vmem:[%s5159_s1 + $0xc8] ss:$16 sps:$4 sm:$0xff]  }
  0x27   : > { %v3829_v8 = vld [vmem:[%s5159_s1 + $0x1e4] ss:$16 sps:$4 sm:$0xff]   ;;  %v4417_v18 = vld [vmem:[%s4247_s30 + $0x16c] ss:$16 sps:$4 sm:$0xff]   ;;  %v4424_v22 = vld [vmem:[%s4247_s30] ss:$16 sps:$4 sm:$0xff]  }
  0x28   : > { %1389 = vmatpush1.bf16.msra.mxu0 %v3768_v26  ;;  %v3844_v20 = vld [vmem:[%s5159_s1 + $0xec] ss:$16 sps:$4 sm:$0xff]   ;;  %v3842_v24 = vld [vmem:[%s5159_s1 + $0xe8] ss:$16 sps:$4 sm:$0xff]   ;;  %v4430_v26 = vld [vmem:[%s4247_s30 + $0x24] ss:$16 sps:$4 sm:$0xff]  }
  0x29   : > { %3573 = vmatpush1.bf16.msra.mxu1 %v4255_v27  ;;  %1390 = vmatprep.subr.bf16.mxu0 %v3770_v28  ;;  %v3850_v28 = vld [vmem:[%s5159_s1 + $0x10c] ss:$16 sps:$4 sm:$0xff]   ;;  %v4440_v30 = vld [vmem:[%s4247_s30 + $0x168] ss:$16 sps:$4 sm:$0xff]   ;;  %s3445_s23 = sshll.u32 %s5206_s15, 8 }
  0x2a   : > { %3565 = vmatprep.subr.bf16.mxu1 %v4264_v29  ;;  %s5114_s26 = scalar_lea.vmem %s5161_s3, %s3445_s23 }
  0x2c   : > { %1391 = vmatpush1.bf16.msra.mxu0 %v3774_v31  ;;  %v3848_v31 = vld [vmem:[%s5159_s1 + $0x108] ss:$16 sps:$4 sm:$0xff]  }
  0x2d   : > { %3574 = vmatpush1.bf16.msra.mxu1 %v4274_v32  ;;  %1392 = vmatprep.subr.bf16.mxu0 %v3776_v33  ;;  %v4447_v33 = vld [vmem:[%s4247_s30 + $0x18c] ss:$16 sps:$4 sm:$0xff]  }
  0x2e   : > { %3566 = vmatprep.subr.bf16.mxu1 %v4285_v34 }
  0x30   : > { %1393 = vmatpush1.bf16.msra.mxu0 %v3780_v35  ;;  %v4456_v35 = vld [vmem:[%s4247_s30 + $0x20] ss:$16 sps:$4 sm:$0xff]  }
  0x31   : > { %3575 = vmatpush1.bf16.msra.mxu1 %v4294_v36  ;;  %1394 = vmatprep.subr.bf16.mxu0 %v3785_v37  ;;  %v3854_v37 = vld [vmem:[%s5159_s1 + $0x128] ss:$16 sps:$4 sm:$0xff]  }
  0x32   : > { %1762 = vmatprep.subr.bf16.mxu1 %v3789_v38  ;;  %v4464_v38 = vld [vmem:[%s4247_s30 + $0x44] ss:$16 sps:$4 sm:$0xff]  }
  0x34   : > { %1672 = vmatmul.mubr.bf16.vlgmr.msra.gmra.mrb[0].mxu1 %v4304_v39  ;;  %1395 = vmatpush1.bf16.msra.mxu0 %v3790_v41  ;;  %v4480_v41 = vld [vmem:[%s4247_s30 + $0x1ac] ss:$16 sps:$4 sm:$0xff]  }
  0x35   : > { %1763 = vmatpush1.bf16.msra.mxu1 %v3787_v40  ;;  %1396 = vmatprep.subr.bf16.mxu0 %v3791_v42  ;;  %v3860_v40 = vld [vmem:[%s5159_s1 + $0x148] ss:$16 sps:$4 sm:$0xff]  }
  0x36   : > { %1764 = vmatprep.subr.bf16.mxu1 %v3796_v43  ;;  %3402 = vmatprep.mubr.msk.bf16.mxu1 %vm1327_vm0, %v4320_v44  ;;  %v3866_v42 = vld [vmem:[%s5159_s1 + $0x168] ss:$16 sps:$4 sm:$0xff]   ;;  %v4497_v43 = vld [vmem:[%s4247_s30 + $0x64] ss:$16 sps:$4 sm:$0xff]  }
  0x38   : > { %1397 = vmatpush1.bf16.msra.mxu0 %v3793_v45  ;;  %v3872_v45 = vld [vmem:[%s5159_s1 + $0x188] ss:$16 sps:$4 sm:$0xff]  }
  0x39   : > { %1765 = vmatpush1.bf16.msra.mxu1 %v3794_v46  ;;  %1398 = vmatprep.subr.bf16.mxu0 %v3799_v47  ;;  %v4513_v46 = vld [vmem:[%s4247_s30 + $0x1cc] ss:$16 sps:$4 sm:$0xff]   ;;  %v4525_v47 = vld [vmem:[%s4247_s30 + $0x84] ss:$16 sps:$4 sm:$0xff]  }
  0x3a   : > { %1766 = vmatprep.subr.bf16.mxu1 %v3805_v48  ;;  %v3880_v48 = vld [vmem:[%s5159_s1 + $0x1a8] ss:$16 sps:$4 sm:$0xff]  }
  0x3c   : > { %1682 = vmatmul.mubr.bf16.gmra.mrb[4].mxu1 %v4338_v49  ;;  %1399 = vmatpush1.bf16.msra.mxu0 %v3802_v50  ;;  %v4542_v50 = vld [vmem:[%s4247_s30 + $0x1ec] ss:$16 sps:$4 sm:$0xff]  }
  0x3d   : > { %1767 = vmatpush1.bf16.msra.mxu1 %v3803_v51  ;;  %1400 = vmatprep.subr.bf16.mxu0 %v3806_v52  ;;  %v3886_v51 = vld [vmem:[%s5159_s1 + $0x1c8] ss:$16 sps:$4 sm:$0xff]   ;;  %v4558_v52 = vld [vmem:[%s4247_s30 + $0xa4] ss:$16 sps:$4 sm:$0xff]  }
  0x3e   : > { %1768 = vmatprep.subr.bf16.mxu1 %v3811_v53  ;;  %3403 = vmatprep.mubr.msk.bf16.mxu1 %vm1327_vm0, %v4356_v55  ;;  %v3893_v53 = vld [vmem:[%s5159_s1 + $0x1e8] ss:$16 sps:$4 sm:$0xff]  }
  0x40   : > { %1401 = vmatpush1.bf16.msra.mxu0 %v3808_v54  ;;  %v4578_v54 = vld [vmem:[%s4247_s30 + $0xa0] ss:$16 sps:$4 sm:$0xff]  }
  0x41   : > { %1769 = vmatpush1.bf16.msra.mxu1 %v3809_v56  ;;  %1402 = vmatprep.subr.bf16.mxu0 %v3814_v58  ;;  %v3907_v56 = vld [vmem:[%s5159_s1 + $0x22c] ss:$16 sps:$4 sm:$0xff]   ;;  %v4596_v58 = vld [vmem:[%s4247_s30 + $0xe4] ss:$16 sps:$4 sm:$0xff]  }
  0x42   : > { %1770 = vmatprep.subr.bf16.mxu1 %v3820_v59  ;;  %v3916_v59 = vld [vmem:[%s5159_s1 + $0x24c] ss:$16 sps:$4 sm:$0xff]  }
  0x44   : > { %1692 = vmatmul.mubr.bf16.gmra.mrb[8].mxu1 %v4374_v60  ;;  %1403 = vmatpush1.bf16.msra.mxu0 %v3817_v61  ;;  %v3914_v61 = vld [vmem:[%s5159_s1 + $0x248] ss:$16 sps:$4 sm:$0xff]  }
  0x45   : > { %1771 = vmatpush1.bf16.msra.mxu1 %v3818_v62  ;;  %1404 = vmatprep.subr.bf16.mxu0 %v3821_v63  ;;  %v3924_v62 = vld [vmem:[%s5159_s1 + $0x26c] ss:$16 sps:$4 sm:$0xff]   ;;  %v3904_v63 = vld [vmem:[%s4247_s30 + $0xe0] ss:$16 sps:$4 sm:$0xff]  }
  0x46   : > { %3404 = vmatprep.mubr.msk.bf16.mxu1 %vm1327_vm0, %v4387_v0  ;;  %1772 = vmatprep.subr.bf16.mxu1 %v3828_v2  ;;  %v3908_v2 = vld [vmem:[%s4247_s30 + $0x104] ss:$16 sps:$4 sm:$0xff]  }
  0x48   : > { %1405 = vmatpush1.bf16.msra.mxu0 %v3823_v4  ;;  %v3922_v4 = vld [vmem:[%s5159_s1 + $0x268] ss:$16 sps:$4 sm:$0xff]  }
  0x49   : > { %1773 = vmatpush1.bf16.msra.mxu1 %v3826_v6  ;;  %1406 = vmatprep.subr.bf16.mxu0 %v3829_v8  ;;  %v3931_v6 = vld [vmem:[%s5159_s1 + $0x28c] ss:$16 sps:$4 sm:$0xff]   ;;  %v3929_v8 = vld [vmem:[%s5159_s1 + $0x288] ss:$16 sps:$4 sm:$0xff]  }
  0x4a   : > { %1774 = vmatprep.subr.bf16.mxu1 %v3838_v10  ;;  %v3940_v10 = vld [vmem:[%s5159_s1 + $0x2ac] ss:$16 sps:$4 sm:$0xff]  }
  0x4c   : > { %1702 = vmatmul.mubr.bf16.gmra.mrb[12].mxu1 %v4408_v12  ;;  %1407 = vmatpush1.bf16.msra.mxu0 %v3832_v14  ;;  %v3910_v14 = vld [vmem:[%s4247_s30 + $0x100] ss:$16 sps:$4 sm:$0xff]  }
  0x4d   : > { %1775 = vmatpush1.bf16.msra.mxu1 %v3836_v16  ;;  %3405 = vmatprep.mubr.msk.bf16.mxu1 %vm1327_vm0, %v4417_v18  ;;  %v3911_v16 = vld [vmem:[%s4247_s30 + $0x124] ss:$16 sps:$4 sm:$0xff]  }
  0x4e   : > { %1776 = vmatprep.subr.bf16.mxu1 %v3844_v20  ;;  %1569 = vmatprep.subr.bf16.mxu0 %v4130_v1  ;;  %v3856_v1 = vld [vmem:[%s5159_s1 + $0x12c] ss:$16 sps:$4 sm:$0xff]   ;;  %v3938_v20 = vld [vmem:[%s5159_s1 + $0x2a8] ss:$16 sps:$4 sm:$0xff]  }
  0x4f   : > { %1409 = vmatmul.mubr.bf16.vlgmr.msra.gmra.mrb[0].mxu0 %v4424_v22 }
  0x50   : > { %1418 = vmatprep.mubr.bf16.mxu0 %v4430_v26  ;;  %1570 = vmatpush1.bf16.msra.mxu0 %v4138_v3  ;;  %v3862_v3 = vld [vmem:[%s5159_s1 + $0x14c] ss:$16 sps:$4 sm:$0xff]  }
  0x51   : > { %1777 = vmatpush1.bf16.msra.mxu1 %v3842_v24  ;;  %1571 = vmatprep.subr.bf16.mxu0 %v4148_v5  ;;  %v4473_v5 = vld [vmem:[%s4247_s30 + $0x188] ss:$16 sps:$4 sm:$0xff]  }
  0x52   : > { %1778 = vmatprep.subr.bf16.mxu1 %v3850_v28  ;;  %v3947_v24 = vld [vmem:[%s5159_s1 + $0x2c8] ss:$16 sps:$4 sm:$0xff]   ;;  %v3913_v28 = vld [vmem:[%s4247_s30 + $0x120] ss:$16 sps:$4 sm:$0xff]  }
  0x54   : > { %1712 = vmatmul.mubr.bf16.gmra.mrb[16].mxu1 %v4440_v30  ;;  %1572 = vmatpush1.bf16.msra.mxu0 %v4156_v7  ;;  %v3868_v7 = vld [vmem:[%s5159_s1 + $0x16c] ss:$16 sps:$4 sm:$0xff]  }
  0x55   : > { %1779 = vmatpush1.bf16.msra.mxu1 %v3848_v31  ;;  %3406 = vmatprep.mubr.msk.bf16.mxu1 %vm1327_vm0, %v4447_v33  ;;  %v3917_v31 = vld [vmem:[%s4247_s30 + $0x144] ss:$16 sps:$4 sm:$0xff]  }
  0x56   : > { %1780 = vmatprep.subr.bf16.mxu1 %v3856_v1  ;;  %1573 = vmatprep.subr.bf16.mxu0 %v4165_v9  ;;  %v4489_v9 = vld [vmem:[%s4247_s30 + $0x40] ss:$16 sps:$4 sm:$0xff]   ;;  %v3956_v1 = vld [vmem:[%s5159_s1 + $0x2e8] ss:$16 sps:$4 sm:$0xff]  }
  0x57   : > { %1419 = vmatmul.mubr.bf16.gmra.mrb[4].mxu0 %v4456_v35 }
  0x58   : > { %1428 = vmatprep.mubr.bf16.mxu0 %v4464_v38  ;;  %1574 = vmatpush1.bf16.msra.mxu0 %v4173_v11  ;;  %v3874_v11 = vld [vmem:[%s5159_s1 + $0x18c] ss:$16 sps:$4 sm:$0xff]  }
  0x59   : > { %1781 = vmatpush1.bf16.msra.mxu1 %v3854_v37  ;;  %1575 = vmatprep.subr.bf16.mxu0 %v4183_v13  ;;  %v4506_v13 = vld [vmem:[%s4247_s30 + $0x1a8] ss:$16 sps:$4 sm:$0xff]  }
  0x5a   : > { %1782 = vmatprep.subr.bf16.mxu1 %v3862_v3  ;;  %v3962_v37 = vld [vmem:[%s5159_s1 + $0x308] ss:$16 sps:$4 sm:$0xff]   ;;  %v3920_v3 = vld [vmem:[%s4247_s30 + $0x164] ss:$16 sps:$4 sm:$0xff]  }
  0x5c   : > { %1722 = vmatmul.mubr.bf16.gmra.mrb[20].mxu1 %v4473_v5  ;;  %1576 = vmatpush1.bf16.msra.mxu0 %v4193_v15  ;;  %v3882_v15 = vld [vmem:[%s5159_s1 + $0x1ac] ss:$16 sps:$4 sm:$0xff]  }
  0x5d   : > { %1783 = vmatpush1.bf16.msra.mxu1 %v3860_v40  ;;  %3407 = vmatprep.mubr.msk.bf16.mxu1 %vm1327_vm0, %v4480_v41  ;;  %v3925_v40 = vld [vmem:[%s4247_s30 + $0x160] ss:$16 sps:$4 sm:$0xff]  }
  0x5e   : > { %1784 = vmatprep.subr.bf16.mxu1 %v3868_v7  ;;  %1577 = vmatprep.subr.bf16.mxu0 %v4202_v17  ;;  %v4522_v17 = vld [vmem:[%s4247_s30 + $0x60] ss:$16 sps:$4 sm:$0xff]   ;;  %v3926_v7 = vld [vmem:[%s4247_s30 + $0x184] ss:$16 sps:$4 sm:$0xff]  }
  0x5f   : > { %1429 = vmatmul.mubr.bf16.gmra.mrb[8].mxu0 %v4489_v9 }
  0x60   : > { %1438 = vmatprep.mubr.bf16.mxu0 %v4497_v43  ;;  %1578 = vmatpush1.bf16.msra.mxu0 %v4210_v19  ;;  %v3888_v19 = vld [vmem:[%s5159_s1 + $0x1cc] ss:$16 sps:$4 sm:$0xff]  }
  0x61   : > { %1785 = vmatpush1.bf16.msra.mxu1 %v3866_v42  ;;  %1579 = vmatprep.subr.bf16.mxu0 %v4223_v21  ;;  %v4539_v21 = vld [vmem:[%s4247_s30 + $0x1c8] ss:$16 sps:$4 sm:$0xff]   ;;  %v3932_v42 = vld [vmem:[%s4247_s30 + $0x1a4] ss:$16 sps:$4 sm:$0xff]  }
  0x62   : > { %1786 = vmatprep.subr.bf16.mxu1 %v3874_v11  ;;  %v3935_v11 = vld [vmem:[%s4247_s30 + $0x1c4] ss:$16 sps:$4 sm:$0xff]  }
  0x64   : > { %1732 = vmatmul.mubr.bf16.gmra.mrb[24].mxu1 %v4506_v13  ;;  %1580 = vmatpush1.bf16.msra.mxu0 %v4233_v23  ;;  %v3895_v23 = vld [vmem:[%s5159_s1 + $0x1ec] ss:$16 sps:$4 sm:$0xff]  }
  0x65   : > { %3408 = vmatprep.mubr.msk.bf16.mxu1 %vm1327_vm0, %v4513_v46  ;;  %1787 = vmatpush1.bf16.msra.mxu1 %v3872_v45  ;;  %v3937_v45 = vld [vmem:[%s4247_s30 + $0x1c0] ss:$16 sps:$4 sm:$0xff]  }
  0x66   : > { %1788 = vmatprep.subr.bf16.mxu1 %v3882_v15  ;;  %1581 = vmatprep.subr.bf16.mxu0 %v4242_v25  ;;  %v4555_v25 = vld [vmem:[%s4247_s30 + $0x80] ss:$16 sps:$4 sm:$0xff]   ;;  %v3941_v15 = vld [vmem:[%s4247_s30 + $0x1e4] ss:$16 sps:$4 sm:$0xff]  }
  0x67   : > { %1439 = vmatmul.mubr.bf16.gmra.mrb[12].mxu0 %v4522_v17 }
  0x68   : > { %1448 = vmatprep.mubr.bf16.mxu0 %v4525_v47  ;;  %1582 = vmatpush1.bf16.msra.mxu0 %v4255_v27  ;;  %v3898_v27 = vld [vmem:[%s5159_s1 + $0x20c] ss:$16 sps:$4 sm:$0xff]  }
  0x69   : > { %1789 = vmatpush1.bf16.msra.mxu1 %v3880_v48  ;;  %1583 = vmatprep.subr.bf16.mxu0 %v4264_v29  ;;  %v4572_v29 = vld [vmem:[%s4247_s30 + $0x1e8] ss:$16 sps:$4 sm:$0xff]  }
  0x6a   : > { %1790 = vmatprep.subr.bf16.mxu1 %v3888_v19  ;;  %v3944_v48 = vld [vmem:[%s4247_s30 + $0x8] ss:$16 sps:$4 sm:$0xff]   ;;  %v3950_v19 = vld [vmem:[%s4247_s30 + $0x2c] ss:$16 sps:$4 sm:$0xff]  }
  0x6c   : > { %1742 = vmatmul.mubr.bf16.gmra.mrb[28].mxu1 %v4539_v21  ;;  %1584 = vmatpush1.bf16.msra.mxu0 %v4274_v32  ;;  %v4582_v32 = vld [vmem:[%s4247_s30 + $0xc4] ss:$16 sps:$4 sm:$0xff]  }
  0x6d   : > { %3409 = vmatprep.mubr.msk.bf16.mxu1 %vm1327_vm0, %v4542_v50  ;;  %1791 = vmatpush1.bf16.msra.mxu1 %v3886_v51  ;;  %v3952_v51 = vld [vmem:[%s4247_s30 + $0x28] ss:$16 sps:$4 sm:$0xff]  }
  0x6e   : > { %1792 = vmatprep.subr.bf16.mxu1 %v3895_v23  ;;  %1585 = vmatprep.subr.bf16.mxu0 %v4285_v34  ;;  %v3896_v34 = vld [vmem:[%s5159_s1 + $0x208] ss:$16 sps:$4 sm:$0xff]   ;;  %v3953_v23 = vld [vmem:[%s4247_s30 + $0x4c] ss:$16 sps:$4 sm:$0xff]  }
  0x6f   : > { %1449 = vmatmul.mubr.bf16.gmra.mrb[16].mxu0 %v4555_v25 }
  0x70   : > { %1458 = vmatprep.mubr.bf16.mxu0 %v4558_v52  ;;  %1586 = vmatpush1.bf16.msra.mxu0 %v4294_v36  ;;  %v4593_v36 = vld [vmem:[%s4247_s30 + $0xc0] ss:$16 sps:$4 sm:$0xff]  }
  0x71   : > { %1793 = vmatpush1.bf16.msra.mxu1 %v3893_v53  ;;  %v3961_v53 = vld [vmem:[%s4247_s30 + $0x68] ss:$16 sps:$4 sm:$0xff]  }
  0x72   : > { %1955 = vmatprep.subr.bf16.mxu1 %v3898_v27  ;;  %v3965_v27 = vld [vmem:[%s4247_s30 + $0x8c] ss:$16 sps:$4 sm:$0xff]  }
  0x74   : > { %1752 = vmatmul.mubr.bf16.gmra.mrb[32].mxu1 %v4572_v29 }
  0x75   : > { %1794 = vmatprep.mubr.bf16.mxu1 %v4363_v57  ;;  %v3905_v57 = vld [vmem:[%s5159_s1 + $0x228] ss:$16 sps:$4 sm:$0xff]  }
  0x77   : > { %1459 = vmatmul.mubr.bf16.gmra.mrb[20].mxu0 %v4578_v54 }
  0x78   : > { %1468 = vmatprep.mubr.bf16.mxu0 %v4582_v32 }
  0x7c   : > { %1795 = vmatmul.mubr.bf16.vlgmr.msra.gmra.mrb[36].mxu1 %v4424_v22  ;;  %v3949_v22 = vld [vmem:[%s5159_s1 + $0x2cc] ss:$16 sps:$4 sm:$0xff]  }
  0x7d   : > { %1956 = vmatpush1.bf16.msra.mxu1 %v3896_v34  ;;  %1804 = vmatprep.mubr.bf16.mxu1 %v4430_v26  ;;  %v3958_v26 = vld [vmem:[%s5159_s1 + $0x2ec] ss:$16 sps:$4 sm:$0xff]   ;;  %v3970_v34 = vld [vmem:[%s4247_s30 + $0xa8] ss:$16 sps:$4 sm:$0xff]  }
  0x7e   : > { %1957 = vmatprep.subr.bf16.mxu1 %v3907_v56  ;;  %v3971_v56 = vld [vmem:[%s4247_s30 + $0xcc] ss:$16 sps:$4 sm:$0xff]  }
  0x7f   : > { %1469 = vmatmul.mubr.bf16.gmra.mrb[24].mxu0 %v4593_v36 }
  0x80   : > { %1478 = vmatprep.mubr.bf16.mxu0 %v4596_v58 }
  0x81   : > { %1958 = vmatpush1.bf16.msra.mxu1 %v3905_v57 }
  0x82   : > { %1959 = vmatprep.subr.bf16.mxu1 %v3916_v59 }
  0x84   : > { %1805 = vmatmul.mubr.bf16.gmra.mrb[40].mxu1 %v4456_v35  ;;  %v3964_v35 = vld [vmem:[%s5159_s1 + $0x30c] ss:$16 sps:$4 sm:$0xff]  }
  0x85   : > { %1814 = vmatprep.mubr.bf16.mxu1 %v4464_v38  ;;  %1960 = vmatpush1.bf16.msra.mxu1 %v3914_v61  ;;  %v3919_v38 = vld [vmem:[%s4247_s30 + $0x140] ss:$16 sps:$4 sm:$0xff]  }
  0x86   : > { %1961 = vmatprep.subr.bf16.mxu1 %v3924_v62 }
  0x87   : > { %1479 = vmatmul.mubr.bf16.gmra.mrb[28].mxu0 %v3904_v63 }
  0x88   : > { %1488 = vmatprep.mubr.bf16.mxu0 %v3908_v2 }
  0x89   : > { %1962 = vmatpush1.bf16.msra.mxu1 %v3922_v4 }
  0x8a   : > { %1963 = vmatprep.subr.bf16.mxu1 %v3931_v6 }
  0x8c   : > { %1815 = vmatmul.mubr.bf16.gmra.mrb[44].mxu1 %v4489_v9  ;;  %v3928_v9 = vld [vmem:[%s4247_s30 + $0x180] ss:$16 sps:$4 sm:$0xff]  }
  0x8d   : > { %1824 = vmatprep.mubr.bf16.mxu1 %v4497_v43  ;;  %1964 = vmatpush1.bf16.msra.mxu1 %v3929_v8  ;;  %v3934_v43 = vld [vmem:[%s4247_s30 + $0x1a0] ss:$16 sps:$4 sm:$0xff]  }
  0x8e   : > { %1965 = vmatprep.subr.bf16.mxu1 %v3940_v10 }
  0x8f   : > { %1489 = vmatmul.mubr.bf16.gmra.mrb[32].mxu0 %v3910_v14 }
  0x90   : > { %1498 = vmatprep.mubr.bf16.mxu0 %v3911_v16 }
  0x91   : > { %1966 = vmatpush1.bf16.msra.mxu1 %v3938_v20 }
  0x92   : > { %1967 = vmatprep.subr.bf16.mxu1 %v3949_v22 }
  0x94   : > { %1825 = vmatmul.mubr.bf16.gmra.mrb[48].mxu1 %v4522_v17  ;;  %v3943_v17 = vld [vmem:[%s4247_s30 + $0x1e0] ss:$16 sps:$4 sm:$0xff]  }
  0x95   : > { %1834 = vmatprep.mubr.bf16.mxu1 %v4525_v47  ;;  %1968 = vmatpush1.bf16.msra.mxu1 %v3947_v24  ;;  %v3946_v47 = vld [vmem:[%s4247_s30 + $0xc] ss:$16 sps:$4 sm:$0xff]   ;;  %v3974_v24 = vld [vmem:[%s5160_s2 + $0x40] sm:$0xff]  }
  0x96   : > { %1969 = vmatprep.subr.bf16.mxu1 %v3958_v26  ;;  %3446 = vmatprep.subr.bf16.mxu0 %v3974_v24 }
  0x97   : > { %1499 = vmatmul.mubr.bf16.gmra.mrb[36].mxu0 %v3913_v28 }
  0x98   : > { %1508 = vmatprep.mubr.bf16.mxu0 %v3917_v31 }
  0x99   : > { %1970 = vmatpush1.bf16.msra.mxu1 %v3956_v1  ;;  %v3976_v1 = vld [vmem:[%s5160_s2 + $0x48] sm:$0xff]  }
  0x9a   : > { %1971 = vmatprep.subr.bf16.mxu1 %v3964_v35  ;;  %v3977_v35 = vld [vmem:[%s5160_s2 + $0x8] sm:$0xff]  }
  0x9c   : > { %1835 = vmatmul.mubr.bf16.gmra.mrb[52].mxu1 %v4555_v25  ;;  %v3955_v25 = vld [vmem:[%s4247_s30 + $0x48] ss:$16 sps:$4 sm:$0xff]  }
  0x9d   : > { %1844 = vmatprep.mubr.bf16.mxu1 %v4558_v52  ;;  %1972 = vmatpush1.bf16.msra.mxu1 %v3962_v37  ;;  %v3959_v52 = vld [vmem:[%s4247_s30 + $0x6c] ss:$16 sps:$4 sm:$0xff]  }
  0x9f   : > { %1509 = vmatmul.mubr.bf16.gmra.mrb[40].mxu0 %v3919_v38 }
  0xa0   : > { %1518 = vmatprep.mubr.bf16.mxu0 %v3920_v3 }
  0xa4   : > { %1845 = vmatmul.mubr.bf16.gmra.mrb[56].mxu1 %v4578_v54  ;;  %v3967_v54 = vld [vmem:[%s4247_s30 + $0x88] ss:$16 sps:$4 sm:$0xff]  }
  0xa5   : > { %1854 = vmatprep.mubr.bf16.mxu1 %v4582_v32  ;;  %v3968_v32 = vld [vmem:[%s4247_s30 + $0xac] ss:$16 sps:$4 sm:$0xff]  }
  0xa7   : > { %1519 = vmatmul.mubr.bf16.gmra.mrb[44].mxu0 %v3925_v40 }
  0xa8   : > { %1528 = vmatprep.mubr.bf16.mxu0 %v3926_v7 }
  0xac   : > { %1855 = vmatmul.mubr.bf16.gmra.mrb[60].mxu1 %v4593_v36  ;;  %v3973_v36 = vld [vmem:[%s4247_s30 + $0xc8] ss:$16 sps:$4 sm:$0xff]  }
  0xad   : > { %1864 = vmatprep.mubr.bf16.mxu1 %v4596_v58 }
  0xaf   : > { %1529 = vmatmul.mubr.bf16.gmra.mrb[48].mxu0 %v3928_v9 }
  0xb0   : > { %1538 = vmatprep.mubr.bf16.mxu0 %v3932_v42 }
  0xb4   : > { %1865 = vmatmul.mubr.bf16.gmra.mrb[64].mxu1 %v3904_v63 }
  0xb5   : > { %1874 = vmatprep.mubr.bf16.mxu1 %v3908_v2 }
  0xb7   : > { %1539 = vmatmul.mubr.bf16.gmra.mrb[52].mxu0 %v3934_v43 }
  0xb8   : > { %1548 = vmatprep.mubr.bf16.mxu0 %v3935_v11 }
  0xbc   : > { %1875 = vmatmul.mubr.bf16.gmra.mrb[68].mxu1 %v3910_v14 }
  0xbd   : > { %1884 = vmatprep.mubr.bf16.mxu1 %v3911_v16 }
  0xbf   : > { %1549 = vmatmul.mubr.bf16.gmra.mrb[56].mxu0 %v3937_v45 }
  0xc0   : > { %1558 = vmatprep.mubr.bf16.mxu0 %v3941_v15 }
  0xc4   : > { %1885 = vmatmul.mubr.bf16.gmra.mrb[72].mxu1 %v3913_v28  ;;  %v3975_v28 = vld [vmem:[%s5160_s2] sm:$0xff]  }
  0xc5   : > { %1894 = vmatprep.mubr.bf16.mxu1 %v3917_v31 }
  0xc7   : > { %1559 = vmatmul.mubr.bf16.gmra.mrb[60].mxu0 %v3943_v17 }
  0xc8   : > { %3394 = vmatprep.mubr.msk.bf16.mxu0 %vm1327_vm0, %v3946_v47 }
  0xcc   : > { %1895 = vmatmul.mubr.bf16.gmra.mrb[76].mxu1 %v3919_v38 }
  0xcd   : > { %1904 = vmatprep.mubr.bf16.mxu1 %v3920_v3 }
  0xcf   : > { %1602 = vmatmul.mubr.bf16.vlgmr.msra.gmra.mrb[0].mxu0 %v3944_v48 }
  0xd0   : > { %3395 = vmatprep.mubr.msk.bf16.mxu0 %vm1327_vm0, %v3950_v19  ;;  %3447 = vmatpush3.bf16.msra.mxu0 %v3975_v28 }
  0xd1   : > { %3448 = vmatprep.subr.bf16.mxu0 %v3976_v1 }
  0xd4   : > { %1905 = vmatmul.mubr.bf16.gmra.mrb[80].mxu1 %v3925_v40  ;;  %3449 = vmatpush3.bf16.msra.mxu0 %v3977_v35  ;;  %v4054_v40 = vld [vmem:[%s4247_s30 + $0xec] ss:$16 sps:$4 sm:$0xff]  }
  0xd5   : > { %1914 = vmatprep.mubr.bf16.mxu1 %v3926_v7 }
  0xd7   : > { %1612 = vmatmul.mubr.bf16.gmra.mrb[4].mxu0 %v3952_v51 }
  0xd8   : > { %3396 = vmatprep.mubr.msk.bf16.mxu0 %vm1327_vm0, %v3953_v23 }
  0xdc   : > { %1915 = vmatmul.mubr.bf16.gmra.mrb[84].mxu1 %v3928_v9  ;;  %v3978_v9 = vld [vmem:[%s5160_s2 + $0x50] sm:$0xff]  }
  0xdd   : > { %1924 = vmatprep.mubr.bf16.mxu1 %v3932_v42  ;;  %v3979_v42 = vld [vmem:[%s5160_s2 + $0x10] sm:$0xff]   ;;  %3450 = vmatprep.subr.bf16.mxu0 %v3978_v9 }
  0xde   : > { %3451 = vmatpush3.bf16.msra.mxu0 %v3979_v42 }
  0xdf   : > { %1622 = vmatmul.mubr.bf16.gmra.mrb[8].mxu0 %v3955_v25 }
  0xe0   : > { %3397 = vmatprep.mubr.msk.bf16.mxu0 %vm1327_vm0, %v3959_v52 }
  0xe4   : > { %1925 = vmatmul.mubr.bf16.gmra.mrb[88].mxu1 %v3934_v43 }
  0xe5   : > { %1934 = vmatprep.mubr.bf16.mxu1 %v3935_v11 }
  0xe7   : > { %1632 = vmatmul.mubr.bf16.gmra.mrb[12].mxu0 %v3961_v53 }
  0xe8   : > { %3398 = vmatprep.mubr.msk.bf16.mxu0 %vm1327_vm0, %v3965_v27 }
  0xec   : > { %1935 = vmatmul.mubr.bf16.gmra.mrb[92].mxu1 %v3937_v45 }
  0xed   : > { %1944 = vmatprep.mubr.bf16.mxu1 %v3941_v15 }
  0xef   : > { %1642 = vmatmul.mubr.bf16.gmra.mrb[16].mxu0 %v3967_v54 }
  0xf0   : > { %3399 = vmatprep.mubr.msk.bf16.mxu0 %vm1327_vm0, %v3968_v32 }
  0xf4   : > { %1945 = vmatmul.mubr.bf16.gmra.mrb[96].mxu1 %v3943_v17  ;;  %v3980_v17 = vld [vmem:[%s5160_s2 + $0x58] sm:$0xff]  }
  0xf5   : > { %3410 = vmatprep.mubr.msk.bf16.mxu1 %vm1327_vm0, %v3946_v47  ;;  %v3981_v47 = vld [vmem:[%s5160_s2 + $0x18] sm:$0xff]   ;;  %3452 = vmatprep.subr.bf16.mxu0 %v3980_v17 }
  0xf6   : > { %3453 = vmatpush3.bf16.msra.mxu0 %v3981_v47 }
  0xf7   : > { %1652 = vmatmul.mubr.bf16.gmra.mrb[20].mxu0 %v3970_v34 }
  0xf8   : > { %3400 = vmatprep.mubr.msk.bf16.mxu0 %vm1327_vm0, %v3971_v56 }
  0xfc   : > { %1988 = vmatmul.mubr.bf16.vlgmr.msra.gmra.mrb[36].mxu1 %v3944_v48 }
  0xfd   : > { %3411 = vmatprep.mubr.msk.bf16.mxu1 %vm1327_vm0, %v3950_v19 }
  0xff   : > { %1662 = vmatmul.mubr.bf16.gmra.mrb[24].mxu0 %v3973_v36 }
 0x104   : > { %1998 = vmatmul.mubr.bf16.gmra.mrb[40].mxu1 %v3952_v51 }
 0x105   : > { %3412 = vmatprep.mubr.msk.bf16.mxu1 %vm1327_vm0, %v3953_v23  ;;  %v3983_v23 = vld [vmem:[%s5160_s2 + $0x20] sm:$0xff]  }
 0x107   : > { %v4700_v58 = vpop.f32.mrb[0].mxu1 }
 0x108   : > { %v4702_v57 = vpop.f32.mrb[1].mxu1 }
 0x109   : > { %v4704_v59 = vpop.f32.mrb[2].mxu1 }
 0x10a   : > { %v4706_v61 = vpop.f32.mrb[3].mxu1 }
 0x10c   : > { %2008 = vmatmul.mubr.bf16.gmra.mrb[44].mxu1 %v3955_v25 }
 0x10d   : > { %3413 = vmatprep.mubr.msk.bf16.mxu1 %vm1327_vm0, %v3959_v52 }
 0x10f   : > { %v4709_v62 = vpop.f32.mrb[4].mxu1 }
 0x110   : > { %v4711_v63 = vpop.f32.mrb[5].mxu1 }
 0x111   : > { %v4713_v2 = vpop.f32.mrb[6].mxu1 }
 0x112   : > { %v4715_v4 = vpop.f32.mrb[7].mxu1 }
 0x114   : > { %2018 = vmatmul.mubr.bf16.gmra.mrb[48].mxu1 %v3961_v53 }
 0x115   : > { %3414 = vmatprep.mubr.msk.bf16.mxu1 %vm1327_vm0, %v3965_v27  ;;  %v3985_v27 = vld [vmem:[%s5160_s2 + $0x28] sm:$0xff]  }
 0x117   : > { %v4718_v6 = vpop.f32.mrb[8].mxu1 }
 0x118   : > { %v4720_v8 = vpop.f32.mrb[9].mxu1 }
 0x119   : > { %v4722_v10 = vpop.f32.mrb[10].mxu1 }
 0x11a   : > { %v4724_v14 = vpop.f32.mrb[11].mxu1 }
 0x11c   : > { %2028 = vmatmul.mubr.bf16.gmra.mrb[52].mxu1 %v3967_v54 }
 0x11d   : > { %3415 = vmatprep.mubr.msk.bf16.mxu1 %vm1327_vm0, %v3968_v32 }
 0x11f   : > { %v4727_v16 = vpop.f32.mrb[12].mxu1 }
 0x120   : > { %v4729_v20 = vpop.f32.mrb[13].mxu1 }
 0x121   : > { %v4731_v22 = vpop.f32.mrb[14].mxu1 }
 0x122   : > { %v4736_v26 = vpop.f32.mrb[15].mxu1 }
 0x124   : > { %2038 = vmatmul.mubr.bf16.gmra.mrb[56].mxu1 %v3970_v34  ;;  %v3987_v34 = vld [vmem:[%s5160_s2 + $0x30] sm:$0xff]  }
 0x125   : > { %3416 = vmatprep.mubr.msk.bf16.mxu1 %vm1327_vm0, %v3971_v56  ;;  %v3988_v56 = vld [vmem:[%s5160_s2 + $0x78] sm:$0xff]  }
 0x127   : > { %v4742_v31 = vpop.f32.mrb[16].mxu1 }
 0x128   : > { %v4750_v37 = vpop.f32.mrb[17].mxu1 }
 0x129   : > { %v4752_v38 = vpop.f32.mrb[18].mxu1 }
 0x12a   : > { %v4754_v3 = vpop.f32.mrb[19].mxu1 }
 0x12c   : > { %2048 = vmatmul.mubr.bf16.gmra.mrb[60].mxu1 %v3973_v36 }
 0x12d   : > { %3417 = vmatprep.mubr.msk.bf16.mxu1 %vm1327_vm0, %v4054_v40 }
 0x12f   : > { %v4758_v7 = vpop.f32.mrb[20].mxu1 }
 0x130   : > { %v4766_v43 = vpop.f32.mrb[21].mxu1 }
 0x131   : > { %v4768_v11 = vpop.f32.mrb[22].mxu1 }
 0x132   : > { %v4770_v45 = vpop.f32.mrb[23].mxu1 }
 0x134   : > { %2058 = vmatmul.mubr.bf16.gmra.mrb[64].mxu1 %v4304_v39 }
 0x135   : > { %3418 = vmatprep.mubr.msk.bf16.mxu1 %vm1327_vm0, %v4320_v44  ;;  %v3982_v44 = vld [vmem:[%s5160_s2 + $0x60] sm:$0xff]  }
 0x136   : > { %3454 = vmatprep.subr.bf16.mxu0 %v3982_v44 }
 0x137   : > { %v4775_v15 = vpop.f32.mrb[24].mxu1  ;;  %3455 = vmatpush3.bf16.msra.mxu0 %v3983_v23 }
 0x138   : > { %v4783_v48 = vpop.f32.mrb[25].mxu1 }
 0x139   : > { %v4785_v19 = vpop.f32.mrb[26].mxu1 }
 0x13a   : > { %v4787_v51 = vpop.f32.mrb[27].mxu1 }
 0x13c   : > { %2068 = vmatmul.mubr.bf16.gmra.mrb[68].mxu1 %v4338_v49  ;;  %v3984_v49 = vld [vmem:[%s5160_s2 + $0x68] sm:$0xff]  }
 0x13d   : > { %3419 = vmatprep.mubr.msk.bf16.mxu1 %vm1327_vm0, %v4356_v55  ;;  %3456 = vmatprep.subr.bf16.mxu0 %v3984_v49 }
 0x13e   : > { %3457 = vmatpush3.bf16.msra.mxu0 %v3985_v27 }
 0x13f   : > { %v4792_v39 = vpop.f32.mrb[28].mxu1 }
 0x140   : > { %v4800_v25 = vpop.f32.mrb[29].mxu1 }
 0x141   : > { %v4802_v52 = vpop.f32.mrb[30].mxu1 }
 0x142   : > { %v4804_v53 = vpop.f32.mrb[31].mxu1 }
 0x144   : > { %2078 = vmatmul.mubr.bf16.gmra.mrb[72].mxu1 %v4374_v60 }
 0x145   : > { %3420 = vmatprep.mubr.msk.bf16.mxu1 %vm1327_vm0, %v4387_v0  ;;  %v3986_v0 = vld [vmem:[%s5160_s2 + $0x70] sm:$0xff]  }
 0x146   : > { %3458 = vmatprep.subr.bf16.mxu0 %v3986_v0 }
 0x147   : > { %v4812_v55 = vpop.f32.mrb[32].mxu1  ;;  %3459 = vmatpush3.bf16.msra.mxu0 %v3987_v34 }
 0x148   : > { %v4817_v54 = vpop.f32.mrb[33].mxu1  ;;  %3460 = vmatprep.subr.bf16.mxu0 %v3988_v56 }
 0x149   : > { %v4819_v32 = vpop.f32.mrb[34].mxu1 }
 0x14a   : > { %v4821_v60 = vpop.f32.mrb[35].mxu1 }
 0x14c   : > { %2088 = vmatmul.mubr.bf16.gmra.mrb[76].mxu1 %v4408_v12  ;;  %v3989_v12 = vld [vmem:[%s5160_s2 + $0x38] sm:$0xff]  }
 0x14d   : > { %3421 = vmatprep.mubr.msk.bf16.mxu1 %vm1327_vm0, %v4417_v18  ;;  %3461 = vmatpush3.bf16.msra.mxu0 %v3989_v12 }
 0x154   : > { %2098 = vmatmul.mubr.bf16.gmra.mrb[80].mxu1 %v4440_v30 }
 0x155   : > { %3422 = vmatprep.mubr.msk.bf16.mxu1 %vm1327_vm0, %v4447_v33 }
 0x15a   : > { %v1480_v18 = vpop.f32.mrb[28].mxu0 }
 0x15b   : > { %v4842_v36 = vadd.f32 %v4700_v58, %v1480_v18  ;;  %v1482_v24 = vpop.f32.mrb[29].mxu0 }
 0x15c   : > { %2108 = vmatmul.mubr.bf16.gmra.mrb[84].mxu1 %v4473_v5  ;;  %v4846_v30 = vadd.f32 %v4702_v57, %v1482_v24  ;;  %v1484_v28 = vpop.f32.mrb[30].mxu0 }
 0x15d   : > { %3423 = vmatprep.mubr.msk.bf16.mxu1 %vm1327_vm0, %v4480_v41  ;;  %v4851_v33 = vadd.f32 %v4704_v59, %v1484_v28  ;;  %v1486_v1 = vpop.f32.mrb[31].mxu0 }
 0x15e   : > { %v4854_v35 = vadd.f32 %v4706_v61, %v1486_v1 }
 0x162   : > { %v1490_v40 = vpop.f32.mrb[32].mxu0 }
 0x163   : > { %v4857_v58 = vadd.f32 %v4709_v62, %v1490_v40  ;;  %v1492_v9 = vpop.f32.mrb[33].mxu0 }
 0x164   : > { %2118 = vmatmul.mubr.bf16.gmra.mrb[88].mxu1 %v4506_v13  ;;  %v4861_v5 = vadd.f32 %v4711_v63, %v1492_v9  ;;  %v1494_v57 = vpop.f32.mrb[34].mxu0 }
 0x165   : > { %3424 = vmatprep.mubr.msk.bf16.mxu1 %vm1327_vm0, %v4513_v46  ;;  %v4866_v41 = vadd.f32 %v4713_v2, %v1494_v57  ;;  %v1496_v59 = vpop.f32.mrb[35].mxu0 }
 0x166   : > { %v4869_v61 = vadd.f32 %v4715_v4, %v1496_v59 }
 0x16a   : > { %v1500_v42 = vpop.f32.mrb[36].mxu0 }
 0x16b   : > { %v4872_v62 = vadd.f32 %v4718_v6, %v1500_v42  ;;  %v1502_v17 = vpop.f32.mrb[37].mxu0 }
 0x16c   : > { %2128 = vmatmul.mubr.bf16.gmra.mrb[92].mxu1 %v4539_v21  ;;  %v4876_v13 = vadd.f32 %v4720_v8, %v1502_v17  ;;  %v1504_v63 = vpop.f32.mrb[38].mxu0 }
 0x16d   : > { %3425 = vmatprep.mubr.msk.bf16.mxu1 %vm1327_vm0, %v4542_v50  ;;  %v4881_v46 = vadd.f32 %v4722_v10, %v1504_v63  ;;  %v1506_v2 = vpop.f32.mrb[39].mxu0 }
 0x16e   : > { %v4884_v4 = vadd.f32 %v4724_v14, %v1506_v2 }
 0x172   : > { %v1510_v47 = vpop.f32.mrb[40].mxu0 }
 0x173   : > { %v4887_v6 = vadd.f32 %v4727_v16, %v1510_v47  ;;  %v1512_v44 = vpop.f32.mrb[41].mxu0 }
 0x174   : > { %2138 = vmatmul.mubr.bf16.gmra.mrb[96].mxu1 %v4572_v29  ;;  %v4891_v21 = vadd.f32 %v4729_v20, %v1512_v44  ;;  %v1514_v8 = vpop.f32.mrb[42].mxu0 }
 0x175   : > { %v4894_v50 = vadd.f32 %v4731_v22, %v1514_v8  ;;  %v1516_v10 = vpop.f32.mrb[43].mxu0 }
 0x176   : > { %v4897_v23 = vadd.f32 %v4736_v26, %v1516_v10 }
 0x17a   : > { %v1520_v14 = vpop.f32.mrb[44].mxu0 }
 0x17b   : > { %v4900_v49 = vadd.f32 %v4742_v31, %v1520_v14  ;;  %v1522_v16 = vpop.f32.mrb[45].mxu0 }
 0x17c   : > { %v4903_v27 = vadd.f32 %v4750_v37, %v1522_v16  ;;  %v1524_v29 = vpop.f32.mrb[46].mxu0 }
 0x17d   : > { %v4906_v20 = vadd.f32 %v4752_v38, %v1524_v29  ;;  %v1526_v0 = vpop.f32.mrb[47].mxu0 }
 0x17e   : > { %5163 = vst [vmem:[#allocation2_spill] sm:$0xff] %v4903_v27  ;;  %v4909_v22 = vadd.f32 %v4754_v3, %v1526_v0 }
 0x17f   : > { %5164 = vst [vmem:[#allocation3_spill] sm:$0xff] %v4906_v20 }
 0x180   : > { %5165 = vst [vmem:[#allocation4_spill] sm:$0xff] %v4909_v22 }
 0x182   : > { %v1530_v34 = vpop.f32.mrb[48].mxu0 }
 0x183   : > { %v4912_v26 = vadd.f32 %v4758_v7, %v1530_v34  ;;  %v1532_v56 = vpop.f32.mrb[49].mxu0 }
 0x184   : > { %v4915_v31 = vadd.f32 %v4766_v43, %v1532_v56  ;;  %v1534_v12 = vpop.f32.mrb[50].mxu0 }
 0x185   : > { %5166 = vst [vmem:[#allocation5_spill] sm:$0xff] %v4912_v26  ;;  %v4918_v37 = vadd.f32 %v4768_v11, %v1534_v12  ;;  %v1536_v18 = vpop.f32.mrb[51].mxu0 }
 0x186   : > { %5167 = vst [vmem:[#allocation6_spill] sm:$0xff] %v4915_v31  ;;  %v4921_v38 = vadd.f32 %v4770_v45, %v1536_v18 }
 0x187   : > { %5168 = vst [vmem:[#allocation7_spill] sm:$0xff] %v4918_v37 }
 0x188   : > { %5169 = vst [vmem:[#allocation8_spill] sm:$0xff] %v4921_v38 }
 0x18a   : > { %v1540_v24 = vpop.f32.mrb[52].mxu0 }
 0x18b   : > { %v4924_v3 = vadd.f32 %v4775_v15, %v1540_v24  ;;  %v1542_v28 = vpop.f32.mrb[53].mxu0 }
 0x18c   : > { %v4927_v7 = vadd.f32 %v4783_v48, %v1542_v28  ;;  %v1544_v1 = vpop.f32.mrb[54].mxu0 }
 0x18d   : > { %5170 = vst [vmem:[#allocation9_spill] sm:$0xff] %v4924_v3  ;;  %v4930_v43 = vadd.f32 %v4785_v19, %v1544_v1  ;;  %v1546_v40 = vpop.f32.mrb[55].mxu0 }
 0x18e   : > { %5171 = vst [vmem:[#allocation10_spill] sm:$0xff] %v4927_v7  ;;  %v4933_v11 = vadd.f32 %v4787_v51, %v1546_v40 }
 0x18f   : > { %5172 = vst [vmem:[#allocation11_spill] sm:$0xff] %v4930_v43 }
 0x190   : > { %5173 = vst [vmem:[#allocation12_spill] sm:$0xff] %v4933_v11 }
 0x192   : > { %v1550_v9 = vpop.f32.mrb[56].mxu0 }
 0x193   : > { %v4936_v45 = vadd.f32 %v4792_v39, %v1550_v9  ;;  %v1552_v57 = vpop.f32.mrb[57].mxu0 }
 0x194   : > { %v4939_v15 = vadd.f32 %v4800_v25, %v1552_v57  ;;  %v1554_v59 = vpop.f32.mrb[58].mxu0 }
 0x195   : > { %5174 = vst [vmem:[#allocation13_spill] sm:$0xff] %v4936_v45  ;;  %v4942_v48 = vadd.f32 %v4802_v52, %v1554_v59  ;;  %v1556_v42 = vpop.f32.mrb[59].mxu0 }
 0x196   : > { %5175 = vst [vmem:[#allocation14_spill] sm:$0xff] %v4939_v15  ;;  %v4945_v19 = vadd.f32 %v4804_v53, %v1556_v42 }
 0x197   : > { %5176 = vst [vmem:[#allocation15_spill] sm:$0xff] %v4942_v48 }
 0x198   : > { %5177 = vst [vmem:[#allocation16_spill] sm:$0xff] %v4945_v19 }
 0x19a   : > { %v1560_v17 = vpop.f32.mrb[60].mxu0 }
 0x19b   : > { %v4948_v51 = vadd.f32 %v4812_v55, %v1560_v17  ;;  %v1562_v63 = vpop.f32.mrb[61].mxu0 }
 0x19c   : > { %v4951_v39 = vadd.f32 %v4817_v54, %v1562_v63  ;;  %v1564_v2 = vpop.f32.mrb[62].mxu0 }
 0x19d   : > { %5178 = vst [vmem:[#allocation17_spill] sm:$0xff] %v4948_v51  ;;  %v4954_v25 = vadd.f32 %v4819_v32, %v1564_v2  ;;  %v1566_v47 = vpop.f32.mrb[63].mxu0 }
 0x19e   : > { %5179 = vst [vmem:[#allocation18_spill] sm:$0xff] %v4951_v39  ;;  %v4957_v52 = vadd.f32 %v4821_v60, %v1566_v47 }
 0x19f   : > { %5180 = vst [vmem:[#allocation19_spill] sm:$0xff] %v4954_v25 }
 0x1a0   : > { %5181 = vst [vmem:[#allocation20_spill] sm:$0xff] %v4957_v52 }
 0x1a2   : > { %v1603_v44 = vpop.f32.mrb[0].mxu0 }
 0x1a3   : > { %v1605_v8 = vpop.f32.mrb[1].mxu0  ;;  %v2148_v63 = vmul.f32 %v1603_v44, %v1603_v44 }
 0x1a4   : > { %v1607_v53 = vpop.f32.mrb[2].mxu0  ;;  %v2149_v52 = vmul.f32 %v1605_v8, %v1605_v8 }
 0x1a5   : > { %v1609_v10 = vpop.f32.mrb[3].mxu0  ;;  %v2150_v51 = vmul.f32 %v1607_v53, %v1607_v53 }
 0x1a6   : > { %v2151_v45 = vmul.f32 %v1609_v10, %v1609_v10 }
 0x1aa   : > { %v1613_v14 = vpop.f32.mrb[4].mxu0 }
 0x1ab   : > { %v1615_v16 = vpop.f32.mrb[5].mxu0  ;;  %v2152_v53 = vmul.f32 %v1613_v14, %v1613_v14 }
 0x1ac   : > { %v1617_v55 = vpop.f32.mrb[6].mxu0 }
 0x1ad   : > { %v1619_v29 = vpop.f32.mrb[7].mxu0 }
 0x1b2   : > { %v1623_v0 = vpop.f32.mrb[8].mxu0 }
 0x1b3   : > { %v1625_v34 = vpop.f32.mrb[9].mxu0 }
 0x1b4   : > { %v4959_v54 = vpop.f32.mrb[10].mxu0 }
 0x1b5   : > { %v4961_v56 = vpop.f32.mrb[11].mxu0 }
 0x1ba   : > { %v4963_v32 = vpop.f32.mrb[12].mxu0 }
 0x1bb   : > { %v4965_v12 = vpop.f32.mrb[13].mxu0 }
 0x1bc   : > { %v4967_v60 = vpop.f32.mrb[14].mxu0 }
 0x1bd   : > { %v4969_v18 = vpop.f32.mrb[15].mxu0 }
 0x1c2   : > { %v4971_v24 = vpop.f32.mrb[16].mxu0 }
 0x1c3   : > { %v4973_v28 = vpop.f32.mrb[17].mxu0 }
 0x1c4   : > { %v4975_v1 = vpop.f32.mrb[18].mxu0 }
 0x1c5   : > { %v4977_v40 = vpop.f32.mrb[19].mxu0 }
 0x1ca   : > { %v4979_v9 = vpop.f32.mrb[20].mxu0 }
 0x1cb   : > { %v4981_v57 = vpop.f32.mrb[21].mxu0 }
 0x1cc   : > { %v4983_v59 = vpop.f32.mrb[22].mxu0 }
 0x1cd   : > { %v4985_v42 = vpop.f32.mrb[23].mxu0 }
 0x1cf   : > { %v1989_v17 = vpop.f32.mrb[36].mxu1 }
 0x1d0   : > { %v2212_v2 = vmul.f32 %v1989_v17, %v1989_v17  ;;  %v1991_v47 = vpop.f32.mrb[37].mxu1 }
 0x1d1   : > { %v2213_v25 = vmul.f32 %v1991_v47, %v1991_v47  ;;  %v1993_v39 = vpop.f32.mrb[38].mxu1 }
 0x1d2   : > { %v2276_v19 = vadd.f32 %v2212_v2, %v2148_v63  ;;  %v2214_v48 = vmul.f32 %v1993_v39, %v1993_v39  ;;  %v1995_v15 = vpop.f32.mrb[39].mxu1  ;;  %v4987_v7 = vpop.f32.mrb[24].mxu0  ;;  %v2153_v2 = vmul.f32 %v1615_v16, %v1615_v16  ;;  %v2157_v16 = vmul.f32 %v1625_v34, %v1625_v34 }
 0x1d3   : > { %v2277_v11 = vadd.f32 %v2213_v25, %v2149_v52  ;;  %v2215_v43 = vmul.f32 %v1995_v15, %v1995_v15  ;;  %v4989_v38 = vpop.f32.mrb[25].mxu0  ;;  %v2154_v15 = vmul.f32 %v1617_v55, %v1617_v55  ;;  %v2158_v55 = vmul.f32 %v4959_v54, %v4959_v54 }
 0x1d4   : > { %v2278_v3 = vadd.f32 %v2214_v48, %v2150_v51  ;;  %v4991_v31 = vpop.f32.mrb[26].mxu0 }
 0x1d5   : > { %v2279_v37 = vadd.f32 %v2215_v43, %v2151_v45  ;;  %v4993_v17 = vpop.f32.mrb[27].mxu0  ;;  %v2155_v43 = vmul.f32 %v1619_v29, %v1619_v29 }
 0x1d6   : > { %v2340_v44 = vpack.c.bf16 %v2278_v3, %v2276_v19 }
 0x1d7   : > { %v1999_v8 = vpop.f32.mrb[40].mxu1  ;;  %v2341_v47 = vpack.c.bf16 %v2279_v37, %v2277_v11  ;;  %v2156_v11 = vmul.f32 %v1623_v0, %v1623_v0 }
 0x1d8   : > { %v2216_v63 = vmul.f32 %v1999_v8, %v1999_v8  ;;  %v2001_v39 = vpop.f32.mrb[41].mxu1 }
 0x1d9   : > { %v2217_v10 = vmul.f32 %v2001_v39, %v2001_v39  ;;  %v2003_v25 = vpop.f32.mrb[42].mxu1  ;;  %2532 = vmatprep.mubr.bf16.mxu0 %v2341_v47 }
 0x1da   : > { %v2280_v52 = vadd.f32 %v2216_v63, %v2152_v53  ;;  %v2218_v48 = vmul.f32 %v2003_v25, %v2003_v25  ;;  %v2005_v51 = vpop.f32.mrb[43].mxu1  ;;  %2533 = vmatmul.mubr.bf16.vlgmr.msra.gmra.mrb[64].mxu0 %v2340_v44  ;;  %v2160_v25 = vmul.f32 %v4963_v32, %v4963_v32 }
 0x1db   : > { %v2281_v45 = vadd.f32 %v2217_v10, %v2153_v2  ;;  %v2219_v26 = vmul.f32 %v2005_v51, %v2005_v51 }
 0x1dc   : > { %v2282_v3 = vadd.f32 %v2218_v48, %v2154_v15 }
 0x1dd   : > { %v2283_v19 = vadd.f32 %v2219_v26, %v2155_v43  ;;  %v2159_v26 = vmul.f32 %v4961_v56, %v4961_v56  ;;  %v2162_v56 = vmul.f32 %v4967_v60, %v4967_v60  ;;  %v2165_v60 = vmul.f32 %v4973_v28, %v4973_v28 }
 0x1de   : > { %v2342_v22 = vpack.c.bf16 %v2282_v3, %v2280_v52 }
 0x1df   : > { %v2009_v20 = vpop.f32.mrb[44].mxu1  ;;  %v2343_v37 = vpack.c.bf16 %v2283_v19, %v2281_v45  ;;  %v2163_v45 = vmul.f32 %v4969_v18, %v4969_v18  ;;  %v2166_v18 = vmul.f32 %v4975_v1, %v4975_v1  ;;  %v2169_v1 = vmul.f32 %v4981_v57, %v4981_v57 }
 0x1e0   : > { %v2220_v14 = vmul.f32 %v2009_v20, %v2009_v20  ;;  %v2011_v8 = vpop.f32.mrb[45].mxu1 }
 0x1e1   : > { %v2221_v39 = vmul.f32 %v2011_v8, %v2011_v8  ;;  %v2013_v27 = vpop.f32.mrb[46].mxu1  ;;  %2540 = vmatprep.mubr.bf16.mxu0 %v2343_v37  ;;  %v2164_v8 = vmul.f32 %v4971_v24, %v4971_v24 }
 0x1e2   : > { %v2284_v47 = vadd.f32 %v2220_v14, %v2156_v11  ;;  %v2222_v44 = vmul.f32 %v2013_v27, %v2013_v27  ;;  %v2015_v29 = vpop.f32.mrb[47].mxu1  ;;  %2541 = vmatmul.mubr.bf16.gmra.mrb[68].mxu0 %v2342_v22  ;;  %v2161_v27 = vmul.f32 %v4965_v12, %v4965_v12 }
 0x1e3   : > { %v2285_v53 = vadd.f32 %v2221_v39, %v2157_v16  ;;  %v2223_v63 = vmul.f32 %v2015_v29, %v2015_v29 }
 0x1e4   : > { %v2286_v2 = vadd.f32 %v2222_v44, %v2158_v55 }
 0x1e5   : > { %v2287_v0 = vadd.f32 %v2223_v63, %v2159_v26 }
 0x1e6   : > { %v2344_v20 = vpack.c.bf16 %v2286_v2, %v2284_v47 }
 0x1e7   : > { %v2019_v10 = vpop.f32.mrb[48].mxu1  ;;  %v2345_v34 = vpack.c.bf16 %v2287_v0, %v2285_v53  ;;  %v2167_v53 = vmul.f32 %v4977_v40, %v4977_v40  ;;  %v2170_v40 = vmul.f32 %v4983_v59, %v4983_v59  ;;  %v2173_v59 = vmul.f32 %v4989_v38, %v4989_v38 }
 0x1e8   : > { %v2224_v15 = vmul.f32 %v2019_v10, %v2019_v10  ;;  %v2021_v52 = vpop.f32.mrb[49].mxu1 }
 0x1e9   : > { %v2225_v54 = vmul.f32 %v2021_v52, %v2021_v52  ;;  %v2023_v22 = vpop.f32.mrb[50].mxu1  ;;  %2548 = vmatprep.mubr.bf16.mxu0 %v2345_v34  ;;  %v2168_v34 = vmul.f32 %v4979_v9, %v4979_v9 }
 0x1ea   : > { %v2288_v48 = vadd.f32 %v2224_v15, %v2160_v25  ;;  %v2226_v51 = vmul.f32 %v2023_v22, %v2023_v22  ;;  %v2025_v43 = vpop.f32.mrb[51].mxu1  ;;  %2549 = vmatmul.mubr.bf16.gmra.mrb[72].mxu0 %v2344_v20 }
 0x1eb   : > { %v2289_v3 = vadd.f32 %v2225_v54, %v2161_v27  ;;  %v2227_v32 = vmul.f32 %v2025_v43, %v2025_v43 }
 0x1ec   : > { %v2290_v19 = vadd.f32 %v2226_v51, %v2162_v56 }
 0x1ed   : > { %v2291_v37 = vadd.f32 %v2227_v32, %v2163_v45 }
 0x1ee   : > { %v2346_v11 = vpack.c.bf16 %v2290_v19, %v2288_v48  ;;  %v2171_v48 = vmul.f32 %v4985_v42, %v4985_v42  ;;  %v2172_v19 = vmul.f32 %v4987_v7, %v4987_v7  ;;  %v2174_v42 = vmul.f32 %v4991_v31, %v4991_v31 }
 0x1ef   : > { %v2029_v14 = vpop.f32.mrb[52].mxu1  ;;  %v2347_v12 = vpack.c.bf16 %v2291_v37, %v2289_v3  ;;  %v2177_v31 = vmul.f32 %v4846_v30, %v4846_v30 }
 0x1f0   : > { %v2228_v16 = vmul.f32 %v2029_v14, %v2029_v14  ;;  %v2031_v39 = vpop.f32.mrb[53].mxu1 }
 0x1f1   : > { %v2229_v55 = vmul.f32 %v2031_v39, %v2031_v39  ;;  %v2033_v47 = vpop.f32.mrb[54].mxu1  ;;  %2556 = vmatprep.mubr.bf16.mxu0 %v2347_v12 }
 0x1f2   : > { %v2292_v44 = vadd.f32 %v2228_v16, %v2164_v8  ;;  %v2230_v29 = vmul.f32 %v2033_v47, %v2033_v47  ;;  %v2035_v26 = vpop.f32.mrb[55].mxu1  ;;  %2557 = vmatmul.mubr.bf16.gmra.mrb[76].mxu0 %v2346_v11 }
 0x1f3   : > { %v2293_v63 = vadd.f32 %v2229_v55, %v2165_v60  ;;  %v2231_v24 = vmul.f32 %v2035_v26, %v2035_v26  ;;  %v2175_v60 = vmul.f32 %v4993_v17, %v4993_v17  ;;  %v2176_v26 = vmul.f32 %v4842_v36, %v4842_v36 }
 0x1f4   : > { %v2294_v2 = vadd.f32 %v2230_v29, %v2166_v18  ;;  %v2178_v17 = vmul.f32 %v4851_v33, %v4851_v33  ;;  %v2181_v33 = vmul.f32 %v4861_v5, %v4861_v5 }
 0x1f5   : > { %v2295_v0 = vadd.f32 %v2231_v24, %v2167_v53 }
 0x1f6   : > { %v2348_v20 = vpack.c.bf16 %v2294_v2, %v2292_v44 }
 0x1f7   : > { %v2039_v10 = vpop.f32.mrb[56].mxu1  ;;  %v2349_v28 = vpack.c.bf16 %v2295_v0, %v2293_v63 }
 0x1f8   : > { %v2232_v25 = vmul.f32 %v2039_v10, %v2039_v10  ;;  %v2041_v15 = vpop.f32.mrb[57].mxu1 }
 0x1f9   : > { %v2233_v52 = vmul.f32 %v2041_v15, %v2041_v15  ;;  %v2043_v27 = vpop.f32.mrb[58].mxu1  ;;  %2564 = vmatprep.mubr.bf16.mxu0 %v2349_v28  ;;  %v2179_v28 = vmul.f32 %v4854_v35, %v4854_v35  ;;  %v2182_v35 = vmul.f32 %v4866_v41, %v4866_v41  ;;  %v2185_v41 = vmul.f32 %v4876_v13, %v4876_v13 }
 0x1fa   : > { %v2296_v54 = vadd.f32 %v2232_v25, %v2168_v34  ;;  %v2234_v22 = vmul.f32 %v2043_v27, %v2043_v27  ;;  %v2045_v56 = vpop.f32.mrb[59].mxu1  ;;  %2565 = vmatmul.mubr.bf16.gmra.mrb[80].mxu0 %v2348_v20  ;;  %v2180_v27 = vmul.f32 %v4857_v58, %v4857_v58 }
 0x1fb   : > { %v2297_v51 = vadd.f32 %v2233_v52, %v2169_v1  ;;  %v2235_v9 = vmul.f32 %v2045_v56, %v2045_v56 }
 0x1fc   : > { %v2298_v43 = vadd.f32 %v2234_v22, %v2170_v40 }
 0x1fd   : > { %v2299_v45 = vadd.f32 %v2235_v9, %v2171_v48 }
 0x1fe   : > { %v2350_v3 = vpack.c.bf16 %v2298_v43, %v2296_v54  ;;  %v2183_v43 = vmul.f32 %v4869_v61, %v4869_v61  ;;  %v2186_v61 = vmul.f32 %v4881_v46, %v4881_v46  ;;  %v2189_v46 = vmul.f32 %v4891_v21, %v4891_v21 }
 0x1ff   : > { %v2049_v32 = vpop.f32.mrb[60].mxu1  ;;  %v2351_v57 = vpack.c.bf16 %v2299_v45, %v2297_v51 }
 0x200   : > { %v2236_v37 = vmul.f32 %v2049_v32, %v2049_v32  ;;  %v2051_v11 = vpop.f32.mrb[61].mxu1 }
 0x201   : > { %v2237_v14 = vmul.f32 %v2051_v11, %v2051_v11  ;;  %v2053_v12 = vpop.f32.mrb[62].mxu1  ;;  %2572 = vmatprep.mubr.bf16.mxu0 %v2351_v57 }
 0x202   : > { %v2300_v8 = vadd.f32 %v2236_v37, %v2172_v19  ;;  %v2238_v16 = vmul.f32 %v2053_v12, %v2053_v12  ;;  %v2055_v39 = vpop.f32.mrb[63].mxu1  ;;  %2573 = vmatmul.mubr.bf16.gmra.mrb[84].mxu0 %v2350_v3  ;;  %v2184_v37 = vmul.f32 %v4872_v62, %v4872_v62 }
 0x203   : > { %v2301_v55 = vadd.f32 %v2237_v14, %v2173_v59  ;;  %v2239_v7 = vmul.f32 %v2055_v39, %v2055_v39  ;;  %v2187_v39 = vmul.f32 %v4884_v4, %v4884_v4  ;;  %v2190_v4 = vmul.f32 %v4894_v50, %v4894_v50  ;;  %v5182_v50 = vld [vmem:[#allocation2_spill] sm:$0xff] }
 0x204   : > { %v2302_v47 = vadd.f32 %v2238_v16, %v2174_v42 }
 0x205   : > { %v2303_v18 = vadd.f32 %v2239_v7, %v2175_v60 }
 0x206   : > { %v2352_v44 = vpack.c.bf16 %v2302_v47, %v2300_v8 }
 0x207   : > { %v2059_v29 = vpop.f32.mrb[64].mxu1  ;;  %v2353_v38 = vpack.c.bf16 %v2303_v18, %v2301_v55 }
 0x208   : > { %v2240_v53 = vmul.f32 %v2059_v29, %v2059_v29  ;;  %v2061_v63 = vpop.f32.mrb[65].mxu1 }
 0x209   : > { %v2241_v24 = vmul.f32 %v2061_v63, %v2061_v63  ;;  %v2063_v2 = vpop.f32.mrb[66].mxu1  ;;  %2580 = vmatprep.mubr.bf16.mxu0 %v2353_v38 }
 0x20a   : > { %v2304_v0 = vadd.f32 %v2240_v53, %v2176_v26  ;;  %v2242_v20 = vmul.f32 %v2063_v2, %v2063_v2  ;;  %v2065_v10 = vpop.f32.mrb[67].mxu1  ;;  %2581 = vmatmul.mubr.bf16.gmra.mrb[88].mxu0 %v2352_v44  ;;  %v2188_v44 = vmul.f32 %v4887_v6, %v4887_v6  ;;  %v2191_v2 = vmul.f32 %v4897_v23, %v4897_v23 }
 0x20b   : > { %v2305_v34 = vadd.f32 %v2241_v24, %v2177_v31  ;;  %v2243_v36 = vmul.f32 %v2065_v10, %v2065_v10 }
 0x20c   : > { %v2306_v25 = vadd.f32 %v2242_v20, %v2178_v17 }
 0x20d   : > { %v2307_v15 = vadd.f32 %v2243_v36, %v2179_v28 }
 0x20e   : > { %v2354_v1 = vpack.c.bf16 %v2306_v25, %v2304_v0 }
 0x20f   : > { %v2069_v52 = vpop.f32.mrb[68].mxu1  ;;  %v2355_v30 = vpack.c.bf16 %v2307_v15, %v2305_v34  ;;  %v2192_v34 = vmul.f32 %v4900_v49, %v4900_v49  ;;  %v2193_v15 = vmul.f32 %v5182_v50, %v5182_v50 }
 0x210   : > { %v2244_v40 = vmul.f32 %v2069_v52, %v2069_v52  ;;  %v2071_v54 = vpop.f32.mrb[69].mxu1 }
 0x211   : > { %v2245_v22 = vmul.f32 %v2071_v54, %v2071_v54  ;;  %v2073_v56 = vpop.f32.mrb[70].mxu1  ;;  %2588 = vmatprep.mubr.bf16.mxu0 %v2355_v30  ;;  %v5183_v30 = vld [vmem:[#allocation3_spill] sm:$0xff] }
 0x212   : > { %v2308_v48 = vadd.f32 %v2244_v40, %v2180_v27  ;;  %v2246_v51 = vmul.f32 %v2073_v56, %v2073_v56  ;;  %v2075_v9 = vpop.f32.mrb[71].mxu1  ;;  %2589 = vmatmul.mubr.bf16.gmra.mrb[92].mxu0 %v2354_v1  ;;  %v2194_v23 = vmul.f32 %v5183_v30, %v5183_v30 }
 0x213   : > { %v2309_v45 = vadd.f32 %v2245_v22, %v2181_v33  ;;  %v2247_v58 = vmul.f32 %v2075_v9, %v2075_v9  ;;  %v5184_v33 = vld [vmem:[#allocation4_spill] sm:$0xff] }
 0x214   : > { %v2310_v3 = vadd.f32 %v2246_v51, %v2182_v35  ;;  %v2195_v22 = vmul.f32 %v5184_v33, %v5184_v33 }
 0x215   : > { %v2311_v32 = vadd.f32 %v2247_v58, %v2183_v43 }
 0x216   : > { %v2356_v57 = vpack.c.bf16 %v2310_v3, %v2308_v48 }
 0x217   : > { %v2079_v19 = vpop.f32.mrb[72].mxu1  ;;  %v2357_v5 = vpack.c.bf16 %v2311_v32, %v2309_v45  ;;  %v5185_v45 = vld [vmem:[#allocation5_spill] sm:$0xff] }
 0x218   : > { %v2248_v11 = vmul.f32 %v2079_v19, %v2079_v19  ;;  %v2081_v59 = vpop.f32.mrb[73].mxu1  ;;  %v2196_v58 = vmul.f32 %v5185_v45, %v5185_v45 }
 0x219   : > { %v2249_v14 = vmul.f32 %v2081_v59, %v2081_v59  ;;  %v2083_v12 = vpop.f32.mrb[74].mxu1  ;;  %2596 = vmatprep.mubr.bf16.mxu0 %v2357_v5 }
 0x21a   : > { %v2312_v42 = vadd.f32 %v2248_v11, %v2184_v37  ;;  %v2250_v8 = vmul.f32 %v2083_v12, %v2083_v12  ;;  %v2085_v16 = vpop.f32.mrb[75].mxu1  ;;  %2597 = vmatmul.mubr.bf16.gmra.mrb[96].mxu0 %v2356_v57  ;;  %v5186_v57 = vld [vmem:[#allocation6_spill] sm:$0xff]  ;;  %v5187_v11 = vld [vmem:[#allocation7_spill] sm:$0xff] }
 0x21b   : > { %v2313_v60 = vadd.f32 %v2249_v14, %v2185_v41  ;;  %v2251_v62 = vmul.f32 %v2085_v16, %v2085_v16  ;;  %v2197_v19 = vmul.f32 %v5186_v57, %v5186_v57  ;;  %v2198_v59 = vmul.f32 %v5187_v11, %v5187_v11 }
 0x21c   : > { %v2314_v55 = vadd.f32 %v2250_v8, %v2186_v61  ;;  %v5188_v61 = vld [vmem:[#allocation8_spill] sm:$0xff] }
 0x21d   : > { %v2315_v7 = vadd.f32 %v2251_v62, %v2187_v39 }
 0x21e   : > { %v2358_v47 = vpack.c.bf16 %v2314_v55, %v2312_v42  ;;  %v2199_v42 = vmul.f32 %v5188_v61, %v5188_v61 }
 0x21f   : > { %v2089_v18 = vpop.f32.mrb[76].mxu1  ;;  %v2359_v13 = vpack.c.bf16 %v2315_v7, %v2313_v60 }
 0x220   : > { %v2252_v29 = vmul.f32 %v2089_v18, %v2089_v18  ;;  %v2091_v38 = vpop.f32.mrb[77].mxu1 }
 0x221   : > { %v2253_v26 = vmul.f32 %v2091_v38, %v2091_v38  ;;  %v2093_v53 = vpop.f32.mrb[78].mxu1  ;;  %2604 = vmatprep.mubr.bf16.mxu0 %v2359_v13 }
 0x222   : > { %v2316_v63 = vadd.f32 %v2252_v29, %v2188_v44  ;;  %v2254_v31 = vmul.f32 %v2093_v53, %v2093_v53  ;;  %v2095_v24 = vpop.f32.mrb[79].mxu1  ;;  %2605 = vmatmul.mubr.bf16.gmra.mrb[100].mxu0 %v2358_v47  ;;  %v5189_v47 = vld [vmem:[#allocation9_spill] sm:$0xff]  ;;  %v5190_v29 = vld [vmem:[#allocation10_spill] sm:$0xff]  ;;  %v5191_v53 = vld [vmem:[#allocation11_spill] sm:$0xff] }
 0x223   : > { %v2317_v17 = vadd.f32 %v2253_v26, %v2189_v46  ;;  %v2255_v6 = vmul.f32 %v2095_v24, %v2095_v24  ;;  %v2200_v18 = vmul.f32 %v5189_v47, %v5189_v47  ;;  %v2201_v38 = vmul.f32 %v5190_v29, %v5190_v29 }
 0x224   : > { %v2318_v0 = vadd.f32 %v2254_v31, %v2190_v4  ;;  %v2202_v4 = vmul.f32 %v5191_v53, %v5191_v53 }
 0x225   : > { %v2319_v20 = vadd.f32 %v2255_v6, %v2191_v2  ;;  %v5192_v2 = vld [vmem:[#allocation12_spill] sm:$0xff] }
 0x226   : > { %v2360_v10 = vpack.c.bf16 %v2318_v0, %v2316_v63 }
 0x227   : > { %v2099_v28 = vpop.f32.mrb[80].mxu1  ;;  %v2361_v21 = vpack.c.bf16 %v2319_v20, %v2317_v17  ;;  %v2203_v17 = vmul.f32 %v5192_v2, %v5192_v2 }
 0x228   : > { %v2256_v36 = vmul.f32 %v2099_v28, %v2099_v28  ;;  %v2101_v25 = vpop.f32.mrb[81].mxu1 }
 0x229   : > { %v2257_v1 = vmul.f32 %v2101_v25, %v2101_v25  ;;  %v2103_v52 = vpop.f32.mrb[82].mxu1  ;;  %2612 = vmatprep.mubr.bf16.mxu0 %v2361_v21 }
 0x22a   : > { %v2320_v27 = vadd.f32 %v2256_v36, %v2192_v34  ;;  %v2258_v40 = vmul.f32 %v2103_v52, %v2103_v52  ;;  %v2105_v54 = vpop.f32.mrb[83].mxu1  ;;  %2613 = vmatmul.mubr.bf16.gmra.mrb[104].mxu0 %v2360_v10  ;;  %v5193_v36 = vld [vmem:[#allocation13_spill] sm:$0xff] }
 0x22b   : > { %v2321_v56 = vadd.f32 %v2257_v1, %v2193_v15  ;;  %v2259_v49 = vmul.f32 %v2105_v54, %v2105_v54  ;;  %v2204_v25 = vmul.f32 %v5193_v36, %v5193_v36  ;;  %v5194_v1 = vld [vmem:[#allocation14_spill] sm:$0xff] }
 0x22c   : > { %v2322_v35 = vadd.f32 %v2258_v40, %v2194_v23  ;;  %v2205_v52 = vmul.f32 %v5194_v1, %v5194_v1 }
 0x22d   : > { %v2323_v48 = vadd.f32 %v2259_v49, %v2195_v22 }
 0x22e   : > { %v2362_v51 = vpack.c.bf16 %v2322_v35, %v2320_v27  ;;  %v5195_v27 = vld [vmem:[#allocation15_spill] sm:$0xff] }
 0x22f   : > { %v2109_v9 = vpop.f32.mrb[84].mxu1  ;;  %v2363_v43 = vpack.c.bf16 %v2323_v48, %v2321_v56  ;;  %v2206_v40 = vmul.f32 %v5195_v27, %v5195_v27  ;;  %v5196_v56 = vld [vmem:[#allocation16_spill] sm:$0xff] }
 0x230   : > { %v2260_v3 = vmul.f32 %v2109_v9, %v2109_v9  ;;  %v2111_v32 = vpop.f32.mrb[85].mxu1  ;;  %v2207_v49 = vmul.f32 %v5196_v56, %v5196_v56 }
 0x231   : > { %v2261_v5 = vmul.f32 %v2111_v32, %v2111_v32  ;;  %v2113_v37 = vpop.f32.mrb[86].mxu1  ;;  %2620 = vmatprep.mubr.bf16.mxu0 %v2363_v43 }
 0x232   : > { %v2324_v41 = vadd.f32 %v2260_v3, %v2196_v58  ;;  %v2262_v14 = vmul.f32 %v2113_v37, %v2113_v37  ;;  %v2115_v12 = vpop.f32.mrb[87].mxu1  ;;  %2621 = vmatmul.mubr.bf16.gmra.mrb[108].mxu0 %v2362_v51  ;;  %v5197_v3 = vld [vmem:[#allocation17_spill] sm:$0xff] }
 0x233   : > { %v2325_v8 = vadd.f32 %v2261_v5, %v2197_v19  ;;  %v2263_v16 = vmul.f32 %v2115_v12, %v2115_v12  ;;  %v2208_v32 = vmul.f32 %v5197_v3, %v5197_v3  ;;  %v5198_v5 = vld [vmem:[#allocation18_spill] sm:$0xff] }
 0x234   : > { %v2326_v39 = vadd.f32 %v2262_v14, %v2198_v59  ;;  %v2209_v37 = vmul.f32 %v5198_v5, %v5198_v5 }
 0x235   : > { %v2327_v60 = vadd.f32 %v2263_v16, %v2199_v42 }
 0x236   : > { %v2364_v62 = vpack.c.bf16 %v2326_v39, %v2324_v41  ;;  %v5199_v41 = vld [vmem:[#allocation19_spill] sm:$0xff] }
 0x237   : > { %v2119_v55 = vpop.f32.mrb[88].mxu1  ;;  %v2365_v7 = vpack.c.bf16 %v2327_v60, %v2325_v8  ;;  %v2210_v14 = vmul.f32 %v5199_v41, %v5199_v41  ;;  %v5200_v8 = vld [vmem:[#allocation20_spill] sm:$0xff] }
 0x238   : > { %v2264_v13 = vmul.f32 %v2119_v55, %v2119_v55  ;;  %v2121_v44 = vpop.f32.mrb[89].mxu1  ;;  %v2211_v16 = vmul.f32 %v5200_v8, %v5200_v8 }
 0x239   : > { %v2265_v46 = vmul.f32 %v2121_v44, %v2121_v44  ;;  %v2123_v26 = vpop.f32.mrb[90].mxu1  ;;  %2628 = vmatprep.mubr.bf16.mxu0 %v2365_v7 }
 0x23a   : > { %v2328_v63 = vadd.f32 %v2264_v13, %v2200_v18  ;;  %v2266_v31 = vmul.f32 %v2123_v26, %v2123_v26  ;;  %v2125_v24 = vpop.f32.mrb[91].mxu1  ;;  %2629 = vmatmul.mubr.bf16.gmra.mrb[112].mxu0 %v2364_v62 }
 0x23b   : > { %v2329_v6 = vadd.f32 %v2265_v46, %v2201_v38  ;;  %v2267_v0 = vmul.f32 %v2125_v24, %v2125_v24 }
 0x23c   : > { %v2330_v20 = vadd.f32 %v2266_v31, %v2202_v4 }
 0x23d   : > { %v2331_v10 = vadd.f32 %v2267_v0, %v2203_v17 }
 0x23e   : > { %v2366_v28 = vpack.c.bf16 %v2330_v20, %v2328_v63  ;;  %v261_v20 = vlaneseq }
 0x23f   : > { %v2129_v21 = vpop.f32.mrb[92].mxu1  ;;  %v2367_v34 = vpack.c.bf16 %v2331_v10, %v2329_v6 }
 0x240   : > { %v2268_v50 = vmul.f32 %v2129_v21, %v2129_v21  ;;  %v2131_v15 = vpop.f32.mrb[93].mxu1 }
 0x241   : > { %v2269_v30 = vmul.f32 %v2131_v15, %v2131_v15  ;;  %v2133_v23 = vpop.f32.mrb[94].mxu1  ;;  %2636 = vmatprep.mubr.bf16.mxu0 %v2367_v34  ;;  %v262_v15 = vshrl.u32 %v261_v20, 7 }
 0x242   : > { %v2332_v54 = vadd.f32 %v2268_v50, %v2204_v25  ;;  %v2270_v33 = vmul.f32 %v2133_v23, %v2133_v23  ;;  %v2135_v22 = vpop.f32.mrb[95].mxu1  ;;  %2637 = vmatmul.mubr.bf16.gmra.mrb[116].mxu0 %v2366_v28 }
 0x243   : > { %v2333_v35 = vadd.f32 %v2269_v30, %v2205_v52  ;;  %v2271_v48 = vmul.f32 %v2135_v22, %v2135_v22 }
 0x244   : > { %v2334_v51 = vadd.f32 %v2270_v33, %v2206_v40  ;;  %v264_v33 = vadd.s32 16, %v262_v15 }
 0x245   : > { %v2335_v9 = vadd.f32 %v2271_v48, %v2207_v49 }
 0x246   : > { %v2368_v43 = vpack.c.bf16 %v2334_v51, %v2332_v54  ;;  %vm329_vm1 = vcmp.lt.s32.totalorder %v264_v33, 21 }
 0x247   : > { %v2139_v45 = vpop.f32.mrb[96].mxu1  ;;  %v2369_v58 = vpack.c.bf16 %v2335_v9, %v2333_v35 }
 0x248   : > { %v2272_v57 = vmul.f32 %v2139_v45, %v2139_v45  ;;  %v2141_v19 = vpop.f32.mrb[97].mxu1 }
 0x249   : > { %v2273_v11 = vmul.f32 %v2141_v19, %v2141_v19  ;;  %v2143_v59 = vpop.f32.mrb[98].mxu1  ;;  %2644 = vmatprep.mubr.bf16.mxu0 %v2369_v58 }
 0x24a   : > { %v2336_v12 = vadd.f32 %v2272_v57, %v2208_v32  ;;  %v2274_v61 = vmul.f32 %v2143_v59, %v2143_v59  ;;  %v2145_v42 = vpop.f32.mrb[99].mxu1  ;;  %2645 = vmatmul.mubr.bf16.gmra.mrb[120].mxu0 %v2368_v43 }
 0x24b   : > { %v2337_v39 = vadd.f32 %v2273_v11, %v2209_v37  ;;  %v2275_v60 = vmul.f32 %v2145_v42, %v2145_v42 }
 0x24c   : > { %v2338_v62 = vadd.f32 %v2274_v61, %v2210_v14 }
 0x24d   : > { %v2339_v55 = vadd.f32 %v2275_v60, %v2211_v16 }
 0x24e   : > { %v2370_v7 = vpack.c.bf16 %v2338_v62, %v2336_v12 }
 0x24f   : > { %v2371_v47 = vpack.c.bf16 %v2339_v55, %v2337_v39 }
 0x251   : > { %2652 = vmatprep.mubr.bf16.mxu0 %v2371_v47 }
 0x252   : > { %2653 = vmatmul.mubr.bf16.gmra.mrb[124].mxu0 %v2370_v7 }
 0x2ad   : > { %v3462_v18 = vpop.f32.mrb[64].mxu0 }
 0x2ae   : > { %v3463_v13 = vpop.f32.mrb[65].mxu0 }
 0x2af   : > { %v3464_v44 = vadd.f32 %v3463_v13, %v3462_v18  ;;  %v3465_v29 = vpop.f32.mrb[66].mxu0 }
 0x2b0   : > { %v3466_v38 = vpop.f32.mrb[67].mxu0 }
 0x2b1   : > { %v2661_v46 = vmax.f32 %v3464_v44, 1e-10  ;;  %v3467_v26 = vadd.f32 %v3466_v38, %v3465_v29 }
 0x2b3   : > { %3990 = vlog2.f32 %v2661_v46  ;;  %v2662_v53 = vmax.f32 %v3467_v26, 1e-10 }
 0x2b5   : > { %3992 = vlog2.f32 %v2662_v53  ;;  %v3468_v4 = vpop.f32.mrb[68].mxu0 }
 0x2b6   : > { %v3469_v63 = vpop.f32.mrb[69].mxu0 }
 0x2b7   : > { %v3470_v31 = vadd.f32 %v3469_v63, %v3468_v4  ;;  %v3471_v24 = vpop.f32.mrb[70].mxu0 }
 0x2b8   : > { %v3472_v2 = vpop.f32.mrb[71].mxu0 }
 0x2b9   : > { %v2663_v17 = vmax.f32 %v3470_v31, 1e-10  ;;  %v3473_v6 = vadd.f32 %v3472_v2, %v3471_v24 }
 0x2bb   : > { %3994 = vlog2.f32 %v2663_v17  ;;  %v2664_v0 = vmax.f32 %v3473_v6, 1e-10 }
 0x2bd   : > { %v3991_v10 = vpop.eup %3990  ;;  %3996 = vlog2.f32 %v2664_v0  ;;  %v3474_v28 = vpop.f32.mrb[72].mxu0 }
 0x2be   : > { %v2694_v21 = vmul.f32 0.6931472, %v3991_v10  ;;  %v3475_v34 = vpop.f32.mrb[73].mxu0 }
 0x2bf   : > { %v3993_v36 = vpop.eup %3992  ;;  %v3476_v25 = vadd.f32 %v3475_v34, %v3474_v28  ;;  %v3477_v50 = vpop.f32.mrb[74].mxu0 }
 0x2c0   : > { %v2696_v1 = vmul.f32 0.6931472, %v3993_v36  ;;  %v3478_v52 = vpop.f32.mrb[75].mxu0  ;;  %v2757_v30 = vmul.f32 4.3429446, %v2694_v21 }
 0x2c1   : > { %v2665_v23 = vmax.f32 %v3476_v25, 1e-10  ;;  %v3479_v27 = vadd.f32 %v3478_v52, %v3477_v50 }
 0x2c2   : > { %2789 = vxpose.xlu0.b32.start [1/16] %v2757_v30, 128  ;;  %v2758_v40 = vmul.f32 4.3429446, %v2696_v1  ;;  %v3019_v22 = vmul.f32 %v2757_v30, %v2757_v30 }
 0x2c3   : > { %3998 = vlog2.f32 %v2665_v23  ;;  %v2666_v54 = vmax.f32 %v3479_v27, 1e-10 }
 0x2c4   : > { %v3020_v56 = vmul.f32 %v2758_v40, %v2758_v40  ;;  %v2981_v49 = vadd.f32 %v2758_v40, %v2757_v30 }
 0x2c5   : > { %v3995_v35 = vpop.eup %3994  ;;  %4000 = vlog2.f32 %v2666_v54  ;;  %v3480_v48 = vpop.f32.mrb[76].mxu0 }
 0x2c6   : > { %v2698_v51 = vmul.f32 0.6931472, %v3995_v35  ;;  %v3481_v9 = vpop.f32.mrb[77].mxu0  ;;  %2790 = vxpose.xlu0.b32.cont [2/16] %v2758_v40, 128  ;;  %v3051_v43 = vadd.f32 %v3020_v56, %v3019_v22 }
 0x2c7   : > { %v3997_v45 = vpop.eup %3996  ;;  %v3482_v58 = vadd.f32 %v3481_v9, %v3480_v48  ;;  %v3483_v3 = vpop.f32.mrb[78].mxu0 }
 0x2c8   : > { %v3484_v32 = vpop.f32.mrb[79].mxu0  ;;  %v2759_v57 = vmul.f32 4.3429446, %v2698_v51  ;;  %v2700_v19 = vmul.f32 0.6931472, %v3997_v45 }
 0x2c9   : > { %v2667_v5 = vmax.f32 %v3482_v58, 1e-10  ;;  %v3485_v37 = vadd.f32 %v3484_v32, %v3483_v3 }
 0x2ca   : > { %v2951_v11 = vsel %vm329_vm1, %v2759_v57, 0.0  ;;  %2791 = vxpose.xlu0.b32.cont [3/16] %v2759_v57, 128  ;;  %v2760_v59 = vmul.f32 4.3429446, %v2700_v19 }
 0x2cb   : > { %4002 = vlog2.f32 %v2667_v5  ;;  %v2668_v41 = vmax.f32 %v3485_v37, 1e-10  ;;  %v3021_v14 = vmul.f32 %v2951_v11, %v2759_v57  ;;  %v2982_v12 = vadd.f32 %v2981_v49, %v2951_v11 }
 0x2cc   : > { %v3022_v61 = vmul.f32 0.0, %v2760_v59 }
 0x2cd   : > { %v3999_v42 = vpop.eup %3998  ;;  %4004 = vlog2.f32 %v2668_v41  ;;  %v3012_v8 = vrot.slane %v2982_v12, 4  ;;  %v3486_v16 = vpop.f32.mrb[80].mxu0  ;;  %v3052_v39 = vadd.f32 %v3051_v43, %v3021_v14 }
 0x2ce   : > { %v3487_v60 = vpop.f32.mrb[81].mxu0  ;;  %2792 = vxpose.xlu0.b32.cont [4/16] %v2760_v59, 128  ;;  %v2702_v62 = vmul.f32 0.6931472, %v3999_v42 }
 0x2cf   : > { %v4001_v55 = vpop.eup %4000  ;;  %v3013_v7 = vadd.f32 %v3012_v8, %v2982_v12  ;;  %v3488_v47 = vadd.f32 %v3487_v60, %v3486_v16  ;;  %v3053_v18 = vadd.f32 %v3052_v39, %v3022_v61  ;;  %v3489_v13 = vpop.f32.mrb[82].mxu0 }
 0x2d0   : > { %v3490_v44 = vpop.f32.mrb[83].mxu0  ;;  %v2761_v29 = vmul.f32 4.3429446, %v2702_v62  ;;  %v2704_v38 = vmul.f32 0.6931472, %v4001_v55 }
 0x2d1   : > { %v3014_v46 = vrot.slane %v3013_v7, 2  ;;  %v2669_v26 = vmax.f32 %v3488_v47, 1e-10  ;;  %v3491_v53 = vadd.f32 %v3490_v44, %v3489_v13 }
 0x2d2   : > { %v3023_v4 = vmul.f32 0.0, %v2761_v29  ;;  %2793 = vxpose.xlu0.b32.cont [5/16] %v2761_v29, 128  ;;  %v2762_v63 = vmul.f32 4.3429446, %v2704_v38 }
 0x2d3   : > { %v3015_v31 = vadd.f32 %v3014_v46, %v3013_v7  ;;  %4006 = vlog2.f32 %v2669_v26  ;;  %v2670_v24 = vmax.f32 %v3491_v53, 1e-10 }
 0x2d4   : > { %v3054_v2 = vadd.f32 %v3053_v18, %v3023_v4  ;;  %v3024_v17 = vmul.f32 0.0, %v2762_v63 }
 0x2d5   : > { %v4003_v6 = vpop.eup %4002  ;;  %v3016_v0 = vrot.slane %v3015_v31, 1  ;;  %4008 = vlog2.f32 %v2670_v24  ;;  %v3492_v20 = vpop.f32.mrb[84].mxu0 }
 0x2d6   : > { %v3493_v10 = vpop.f32.mrb[85].mxu0  ;;  %2794 = vxpose.xlu0.b32.cont [6/16] %v2762_v63, 128  ;;  %v3055_v28 = vadd.f32 %v3054_v2, %v3024_v17  ;;  %v2706_v21 = vmul.f32 0.6931472, %v4003_v6 }
 0x2d7   : > { %v4005_v34 = vpop.eup %4004  ;;  %v3017_v36 = vadd.f32 %v3016_v0, %v3015_v31  ;;  %v3494_v25 = vadd.f32 %v3493_v10, %v3492_v20  ;;  %v3495_v50 = vpop.f32.mrb[86].mxu0 }
 0x2d8   : > { %v3496_v15 = vpop.f32.mrb[87].mxu0  ;;  %v2763_v1 = vmul.f32 4.3429446, %v2706_v21  ;;  %v2708_v52 = vmul.f32 0.6931472, %v4005_v34 }
 0x2d9   : > { %v2671_v30 = vmax.f32 %v3494_v25, 1e-10  ;;  %v3497_v23 = vadd.f32 %v3496_v15, %v3495_v50  ;;  %3018 = vst [vmem:[%s5107_s22] sm:$0x1] %v3017_v36 }
 0x2da   : > { %v3025_v27 = vmul.f32 0.0, %v2763_v1  ;;  %2795 = vxpose.xlu0.b32.cont [7/16] %v2763_v1, 128  ;;  %v2764_v40 = vmul.f32 4.3429446, %v2708_v52 }
 0x2db   : > { %4010 = vlog2.f32 %v2671_v30  ;;  %v2672_v54 = vmax.f32 %v3497_v23, 1e-10 }
 0x2dc   : > { %v3056_v33 = vadd.f32 %v3055_v28, %v3025_v27  ;;  %v3026_v22 = vmul.f32 0.0, %v2764_v40 }
 0x2dd   : > { %v4007_v56 = vpop.eup %4006  ;;  %4012 = vlog2.f32 %v2672_v54  ;;  %v3498_v49 = vpop.f32.mrb[88].mxu0 }
 0x2de   : > { %2796 = vxpose.xlu0.b32.cont [8/16] %v2764_v40, 128  ;;  %v3057_v35 = vadd.f32 %v3056_v33, %v3026_v22  ;;  %v3499_v48 = vpop.f32.mrb[89].mxu0  ;;  %v2710_v51 = vmul.f32 0.6931472, %v4007_v56 }
 0x2df   : > { %v4009_v9 = vpop.eup %4008  ;;  %v3500_v43 = vadd.f32 %v3499_v48, %v3498_v49  ;;  %v3501_v45 = vpop.f32.mrb[90].mxu0 }
 0x2e0   : > { %v3502_v58 = vpop.f32.mrb[91].mxu0  ;;  %v2765_v3 = vmul.f32 4.3429446, %v2710_v51  ;;  %v2712_v32 = vmul.f32 0.6931472, %v4009_v9 }
 0x2e1   : > { %v2673_v57 = vmax.f32 %v3500_v43, 1e-10  ;;  %v3503_v19 = vadd.f32 %v3502_v58, %v3501_v45 }
 0x2e2   : > { %v3027_v5 = vmul.f32 0.0, %v2765_v3  ;;  %2797 = vxpose.xlu0.b32.cont [9/16] %v2765_v3, 128  ;;  %v2766_v37 = vmul.f32 4.3429446, %v2712_v32 }
 0x2e3   : > { %4014 = vlog2.f32 %v2673_v57  ;;  %v2674_v11 = vmax.f32 %v3503_v19, 1e-10 }
 0x2e4   : > { %v3058_v59 = vadd.f32 %v3057_v35, %v3027_v5  ;;  %v3028_v41 = vmul.f32 0.0, %v2766_v37 }
 0x2e5   : > { %v4011_v14 = vpop.eup %4010  ;;  %4016 = vlog2.f32 %v2674_v11  ;;  %v3504_v12 = vpop.f32.mrb[92].mxu0 }
 0x2e6   : > { %2798 = vxpose.xlu0.b32.cont [10/16] %v2766_v37, 128  ;;  %v3059_v61 = vadd.f32 %v3058_v59, %v3028_v41  ;;  %v3505_v42 = vpop.f32.mrb[93].mxu0  ;;  %v2714_v8 = vmul.f32 0.6931472, %v4011_v14 }
 0x2e7   : > { %v4013_v16 = vpop.eup %4012  ;;  %v3506_v39 = vadd.f32 %v3505_v42, %v3504_v12  ;;  %v3507_v60 = vpop.f32.mrb[94].mxu0 }
 0x2e8   : > { %v3508_v62 = vpop.f32.mrb[95].mxu0  ;;  %v2767_v55 = vmul.f32 4.3429446, %v2714_v8  ;;  %v2716_v7 = vmul.f32 0.6931472, %v4013_v16 }
 0x2e9   : > { %v2675_v47 = vmax.f32 %v3506_v39, 1e-10  ;;  %v3509_v18 = vadd.f32 %v3508_v62, %v3507_v60 }
 0x2ea   : > { %v3029_v13 = vmul.f32 0.0, %v2767_v55  ;;  %2799 = vxpose.xlu0.b32.cont [11/16] %v2767_v55, 128  ;;  %v2768_v44 = vmul.f32 4.3429446, %v2716_v7 }
 0x2eb   : > { %4018 = vlog2.f32 %v2675_v47  ;;  %v2676_v29 = vmax.f32 %v3509_v18, 1e-10 }
 0x2ec   : > { %v3060_v38 = vadd.f32 %v3059_v61, %v3029_v13  ;;  %v3030_v46 = vmul.f32 0.0, %v2768_v44 }
 0x2ed   : > { %v4015_v26 = vpop.eup %4014  ;;  %4020 = vlog2.f32 %v2676_v29  ;;  %v3510_v53 = vpop.f32.mrb[96].mxu0 }
 0x2ee   : > { %2800 = vxpose.xlu0.b32.cont [12/16] %v2768_v44, 128  ;;  %v3061_v4 = vadd.f32 %v3060_v38, %v3030_v46  ;;  %v3511_v63 = vpop.f32.mrb[97].mxu0  ;;  %v2718_v31 = vmul.f32 0.6931472, %v4015_v26 }
 0x2ef   : > { %v4017_v24 = vpop.eup %4016  ;;  %v3512_v2 = vadd.f32 %v3511_v63, %v3510_v53  ;;  %v3513_v17 = vpop.f32.mrb[98].mxu0 }
 0x2f0   : > { %v3514_v6 = vpop.f32.mrb[99].mxu0  ;;  %v2769_v0 = vmul.f32 4.3429446, %v2718_v31  ;;  %v2720_v20 = vmul.f32 0.6931472, %v4017_v24 }
 0x2f1   : > { %v2677_v10 = vmax.f32 %v3512_v2, 1e-10  ;;  %v3515_v28 = vadd.f32 %v3514_v6, %v3513_v17 }
 0x2f2   : > { %2801 = vxpose.xlu0.b32.cont [13/16] %v2769_v0, 128  ;;  %v3031_v21 = vmul.f32 0.0, %v2769_v0  ;;  %v2770_v34 = vmul.f32 4.3429446, %v2720_v20 }
 0x2f3   : > { %4022 = vlog2.f32 %v2677_v10  ;;  %v2678_v36 = vmax.f32 %v3515_v28, 1e-10 }
 0x2f4   : > { %v3062_v25 = vadd.f32 %v3061_v4, %v3031_v21  ;;  %v3032_v50 = vmul.f32 0.0, %v2770_v34 }
 0x2f5   : > { %v4019_v15 = vpop.eup %4018  ;;  %4024 = vlog2.f32 %v2678_v36  ;;  %v3516_v1 = vpop.f32.mrb[100].mxu0 }
 0x2f6   : > { %v3517_v52 = vpop.f32.mrb[101].mxu0  ;;  %2802 = vxpose.xlu0.b32.cont [14/16] %v2770_v34, 128  ;;  %v3063_v30 = vadd.f32 %v3062_v25, %v3032_v50  ;;  %v2722_v23 = vmul.f32 0.6931472, %v4019_v15 }
 0x2f7   : > { %v4021_v27 = vpop.eup %4020  ;;  %v3518_v40 = vadd.f32 %v3517_v52, %v3516_v1  ;;  %v3519_v54 = vpop.f32.mrb[102].mxu0 }
 0x2f8   : > { %v3520_v33 = vpop.f32.mrb[103].mxu0  ;;  %v2771_v22 = vmul.f32 4.3429446, %v2722_v23  ;;  %v2724_v56 = vmul.f32 0.6931472, %v4021_v27 }
 0x2f9   : > { %v2679_v49 = vmax.f32 %v3518_v40, 1e-10  ;;  %v3521_v35 = vadd.f32 %v3520_v33, %v3519_v54 }
 0x2fa   : > { %v3033_v48 = vmul.f32 0.0, %v2771_v22  ;;  %2803 = vxpose.xlu0.b32.cont [15/16] %v2771_v22, 128  ;;  %v2772_v51 = vmul.f32 4.3429446, %v2724_v56 }
 0x2fb   : > { %4026 = vlog2.f32 %v2679_v49  ;;  %v2680_v9 = vmax.f32 %v3521_v35, 1e-10 }
 0x2fc   : > { %v3064_v43 = vadd.f32 %v3063_v30, %v3033_v48  ;;  %v3034_v45 = vmul.f32 0.0, %v2772_v51 }
 0x2fd   : > { %v4023_v58 = vpop.eup %4022  ;;  %4028 = vlog2.f32 %v2680_v9  ;;  %v3522_v3 = vpop.f32.mrb[104].mxu0 }
 0x2fe   : > { %v3523_v32 = vpop.f32.mrb[105].mxu0  ;;  %2804 = vxpose.xlu0.b32.end [16/16] %v2772_v51, 128  ;;  %v3065_v57 = vadd.f32 %v3064_v43, %v3034_v45  ;;  %v2726_v19 = vmul.f32 0.6931472, %v4023_v58 }
 0x2ff   : > { %v4025_v5 = vpop.eup %4024  ;;  %v3524_v37 = vadd.f32 %v3523_v32, %v3522_v3  ;;  %v3525_v11 = vpop.f32.mrb[106].mxu0 }
 0x300   : > { %v3526_v59 = vpop.f32.mrb[107].mxu0  ;;  %v2773_v41 = vmul.f32 4.3429446, %v2726_v19  ;;  %v2728_v14 = vmul.f32 0.6931472, %v4025_v5 }
 0x301   : > { %v2681_v12 = vmax.f32 %v3524_v37, 1e-10  ;;  %v3527_v61 = vadd.f32 %v3526_v59, %v3525_v11 }
 0x302   : > { %2821 = vxpose.xlu1.b32.start [1/16] %v2773_v41, 128  ;;  %v3035_v42 = vmul.f32 0.0, %v2773_v41  ;;  %v2774_v8 = vmul.f32 4.3429446, %v2728_v14 }
 0x303   : > { %4030 = vlog2.f32 %v2681_v12  ;;  %v2682_v16 = vmax.f32 %v3527_v61, 1e-10 }
 0x304   : > { %v3066_v39 = vadd.f32 %v3065_v57, %v3035_v42  ;;  %v3036_v60 = vmul.f32 0.0, %v2774_v8 }
 0x305   : > { %v4027_v62 = vpop.eup %4026  ;;  %4032 = vlog2.f32 %v2682_v16  ;;  %v3528_v55 = vpop.f32.mrb[108].mxu0 }
 0x306   : > { %v3529_v7 = vpop.f32.mrb[109].mxu0  ;;  %2822 = vxpose.xlu1.b32.cont [2/16] %v2774_v8, 128  ;;  %v3067_v47 = vadd.f32 %v3066_v39, %v3036_v60  ;;  %v2730_v18 = vmul.f32 0.6931472, %v4027_v62 }
 0x307   : > { %v4029_v13 = vpop.eup %4028  ;;  %v3530_v44 = vadd.f32 %v3529_v7, %v3528_v55  ;;  %v3531_v29 = vpop.f32.mrb[110].mxu0 }
 0x308   : > { %v3532_v38 = vpop.f32.mrb[111].mxu0  ;;  %v2775_v46 = vmul.f32 4.3429446, %v2730_v18  ;;  %v2732_v26 = vmul.f32 0.6931472, %v4029_v13 }
 0x309   : > { %v2683_v53 = vmax.f32 %v3530_v44, 1e-10  ;;  %v3533_v4 = vadd.f32 %v3532_v38, %v3531_v29 }
 0x30a   : > { %v3037_v63 = vmul.f32 0.0, %v2775_v46  ;;  %2823 = vxpose.xlu1.b32.cont [3/16] %v2775_v46, 128  ;;  %v2776_v31 = vmul.f32 4.3429446, %v2732_v26 }
 0x30b   : > { %4034 = vlog2.f32 %v2683_v53  ;;  %v2684_v24 = vmax.f32 %v3533_v4, 1e-10 }
 0x30c   : > { %v3068_v2 = vadd.f32 %v3067_v47, %v3037_v63  ;;  %v3038_v17 = vmul.f32 0.0, %v2776_v31 }
 0x30d   : > { %v4031_v6 = vpop.eup %4030  ;;  %4036 = vlog2.f32 %v2684_v24  ;;  %v3534_v0 = vpop.f32.mrb[112].mxu0 }
 0x30e   : > { %v3535_v20 = vpop.f32.mrb[113].mxu0  ;;  %2824 = vxpose.xlu1.b32.cont [4/16] %v2776_v31, 128  ;;  %v3069_v10 = vadd.f32 %v3068_v2, %v3038_v17  ;;  %v2734_v28 = vmul.f32 0.6931472, %v4031_v6 }
 0x30f   : > { %v4033_v21 = vpop.eup %4032  ;;  %v3536_v34 = vadd.f32 %v3535_v20, %v3534_v0  ;;  %v3537_v36 = vpop.f32.mrb[114].mxu0 }
 0x310   : > { %v3538_v25 = vpop.f32.mrb[115].mxu0  ;;  %v2777_v50 = vmul.f32 4.3429446, %v2734_v28  ;;  %v2736_v15 = vmul.f32 0.6931472, %v4033_v21 }
 0x311   : > { %v2685_v1 = vmax.f32 %v3536_v34, 1e-10  ;;  %v3539_v52 = vadd.f32 %v3538_v25, %v3537_v36 }
 0x312   : > { %v3039_v30 = vmul.f32 0.0, %v2777_v50  ;;  %2825 = vxpose.xlu1.b32.cont [5/16] %v2777_v50, 128  ;;  %v2778_v23 = vmul.f32 4.3429446, %v2736_v15 }
 0x313   : > { %4038 = vlog2.f32 %v2685_v1  ;;  %v2686_v27 = vmax.f32 %v3539_v52, 1e-10 }
 0x314   : > { %v3070_v40 = vadd.f32 %v3069_v10, %v3039_v30  ;;  %v3040_v54 = vmul.f32 0.0, %v2778_v23 }
 0x315   : > { %v4035_v33 = vpop.eup %4034  ;;  %4040 = vlog2.f32 %v2686_v27  ;;  %v3540_v22 = vpop.f32.mrb[116].mxu0 }
 0x316   : > { %v3541_v56 = vpop.f32.mrb[117].mxu0  ;;  %2826 = vxpose.xlu1.b32.cont [6/16] %v2778_v23, 128  ;;  %v3071_v49 = vadd.f32 %v3070_v40, %v3040_v54  ;;  %v2738_v35 = vmul.f32 0.6931472, %v4035_v33 }
 0x317   : > { %v4037_v48 = vpop.eup %4036  ;;  %v3542_v51 = vadd.f32 %v3541_v56, %v3540_v22  ;;  %v3543_v9 = vpop.f32.mrb[118].mxu0 }
 0x318   : > { %v3544_v43 = vpop.f32.mrb[119].mxu0  ;;  %v2779_v45 = vmul.f32 4.3429446, %v2738_v35  ;;  %v2740_v58 = vmul.f32 0.6931472, %v4037_v48 }
 0x319   : > { %v2687_v3 = vmax.f32 %v3542_v51, 1e-10  ;;  %v3545_v32 = vadd.f32 %v3544_v43, %v3543_v9 }
 0x31a   : > { %v3041_v57 = vmul.f32 0.0, %v2779_v45  ;;  %2827 = vxpose.xlu1.b32.cont [7/16] %v2779_v45, 128  ;;  %v2780_v19 = vmul.f32 4.3429446, %v2740_v58 }
 0x31b   : > { %4042 = vlog2.f32 %v2687_v3  ;;  %v2688_v5 = vmax.f32 %v3545_v32, 1e-10 }
 0x31c   : > { %v3072_v37 = vadd.f32 %v3071_v49, %v3041_v57  ;;  %v3042_v11 = vmul.f32 0.0, %v2780_v19 }
 0x31d   : > { %v4039_v59 = vpop.eup %4038  ;;  %4044 = vlog2.f32 %v2688_v5  ;;  %v3546_v41 = vpop.f32.mrb[120].mxu0 }
 0x31e   : > { %v3547_v14 = vpop.f32.mrb[121].mxu0  ;;  %2828 = vxpose.xlu1.b32.cont [8/16] %v2780_v19, 128  ;;  %v3073_v12 = vadd.f32 %v3072_v37, %v3042_v11  ;;  %v2742_v61 = vmul.f32 0.6931472, %v4039_v59 }
 0x31f   : > { %v4041_v42 = vpop.eup %4040  ;;  %v3548_v8 = vadd.f32 %v3547_v14, %v3546_v41  ;;  %v3549_v16 = vpop.f32.mrb[122].mxu0 }
 0x320   : > { %v3550_v39 = vpop.f32.mrb[123].mxu0  ;;  %v2781_v60 = vmul.f32 4.3429446, %v2742_v61  ;;  %v2744_v62 = vmul.f32 0.6931472, %v4041_v42 }
 0x321   : > { %v2689_v55 = vmax.f32 %v3548_v8, 1e-10  ;;  %v3551_v7 = vadd.f32 %v3550_v39, %v3549_v16 }
 0x322   : > { %v3043_v47 = vmul.f32 0.0, %v2781_v60  ;;  %2829 = vxpose.xlu1.b32.cont [9/16] %v2781_v60, 128  ;;  %v2782_v18 = vmul.f32 4.3429446, %v2744_v62 }
 0x323   : > { %4046 = vlog2.f32 %v2689_v55  ;;  %v2690_v13 = vmax.f32 %v3551_v7, 1e-10 }
 0x324   : > { %v3074_v44 = vadd.f32 %v3073_v12, %v3043_v47  ;;  %v3044_v29 = vmul.f32 0.0, %v2782_v18 }
 0x325   : > { %v4043_v38 = vpop.eup %4042  ;;  %4048 = vlog2.f32 %v2690_v13  ;;  %v3552_v46 = vpop.f32.mrb[124].mxu0 }
 0x326   : > { %v3553_v26 = vpop.f32.mrb[125].mxu0  ;;  %2830 = vxpose.xlu1.b32.cont [10/16] %v2782_v18, 128  ;;  %v3075_v53 = vadd.f32 %v3074_v44, %v3044_v29  ;;  %v2746_v4 = vmul.f32 0.6931472, %v4043_v38 }
 0x327   : > { %v4045_v63 = vpop.eup %4044  ;;  %v3554_v31 = vadd.f32 %v3553_v26, %v3552_v46  ;;  %v3555_v24 = vpop.f32.mrb[126].mxu0 }
 0x328   : > { %v3556_v2 = vpop.f32.mrb[127].mxu0  ;;  %v2783_v17 = vmul.f32 4.3429446, %v2746_v4  ;;  %v2748_v6 = vmul.f32 0.6931472, %v4045_v63 }
 0x329   : > { %v2691_v0 = vmax.f32 %v3554_v31, 1e-10  ;;  %v3557_v20 = vadd.f32 %v3556_v2, %v3555_v24 }
 0x32a   : > { %v3045_v10 = vmul.f32 0.0, %v2783_v17  ;;  %2831 = vxpose.xlu1.b32.cont [11/16] %v2783_v17, 128  ;;  %v2784_v28 = vmul.f32 4.3429446, %v2748_v6 }
 0x32b   : > { %4050 = vlog2.f32 %v2691_v0  ;;  %v2692_v21 = vmax.f32 %v3557_v20, 1e-10 }
 0x32c   : > { %v3076_v34 = vadd.f32 %v3075_v53, %v3045_v10  ;;  %v3046_v36 = vmul.f32 0.0, %v2784_v28 }
 0x32d   : > { %v4047_v25 = vpop.eup %4046  ;;  %4052 = vlog2.f32 %v2692_v21 }
 0x32e   : > { %2832 = vxpose.xlu1.b32.cont [12/16] %v2784_v28, 128  ;;  %v3077_v50 = vadd.f32 %v3076_v34, %v3046_v36  ;;  %v2750_v15 = vmul.f32 0.6931472, %v4047_v25 }
 0x32f   : > { %v4049_v1 = vpop.eup %4048 }
 0x330   : > { %v2785_v52 = vmul.f32 4.3429446, %v2750_v15  ;;  %v2752_v30 = vmul.f32 0.6931472, %v4049_v1 }
 0x332   : > { %v3047_v23 = vmul.f32 0.0, %v2785_v52  ;;  %2833 = vxpose.xlu1.b32.cont [13/16] %v2785_v52, 128  ;;  %v2786_v27 = vmul.f32 4.3429446, %v2752_v30 }
 0x334   : > { %v3078_v40 = vadd.f32 %v3077_v50, %v3047_v23  ;;  %v3048_v54 = vmul.f32 0.0, %v2786_v27 }
 0x335   : > { %v4051_v33 = vpop.eup %4050 }
 0x336   : > { %2834 = vxpose.xlu1.b32.cont [14/16] %v2786_v27, 128  ;;  %v3079_v22 = vadd.f32 %v3078_v40, %v3048_v54  ;;  %v2754_v56 = vmul.f32 0.6931472, %v4051_v33 }
 0x337   : > { %v4053_v49 = vpop.eup %4052 }
 0x338   : > { %v2787_v35 = vmul.f32 4.3429446, %v2754_v56  ;;  %v2756_v48 = vmul.f32 0.6931472, %v4053_v49 }
 0x33a   : > { %v3049_v51 = vmul.f32 0.0, %v2787_v35  ;;  %2835 = vxpose.xlu1.b32.cont [15/16] %v2787_v35, 128  ;;  %v2788_v9 = vmul.f32 4.3429446, %v2756_v48 }
 0x33c   : > { %v3080_v43 = vadd.f32 %v3079_v22, %v3049_v51  ;;  %v3050_v45 = vmul.f32 0.0, %v2788_v9 }
 0x33e   : > { %2836 = vxpose.xlu1.b32.end [16/16] %v2788_v9, 128  ;;  %v3081_v58 = vadd.f32 %v3080_v43, %v3050_v45 }
 0x340   : > { %v3082_v3 = vrot.slane %v3081_v58, 4 }
 0x342   : > { %v3083_v32 = vadd.f32 %v3082_v3, %v3081_v58  ;;  %v2805_v57 = vpop.trf.xlu0 }
 0x343   : > { %2853 = vst [vmem:[%s5114_s26] sm:$0xff] %v2805_v57 }
 0x344   : > { %v3084_v19 = vrot.slane %v3083_v32, 2 }
 0x346   : > { %v3085_v5 = vadd.f32 %v3084_v19, %v3083_v32  ;;  %v2806_v37 = vpop.trf.xlu0 }
 0x347   : > { %2855 = vst [vmem:[%s5114_s26 + $0x10] sm:$0xff] %v2806_v37 }
 0x348   : > { %v3086_v11 = vrot.slane %v3085_v5, 1 }
 0x34a   : > { %v3087_v59 = vadd.f32 %v3086_v11, %v3085_v5  ;;  %v2807_v41 = vpop.trf.xlu0 }
 0x34b   : > { %2857 = vst [vmem:[%s5114_s26 + $0x20] sm:$0xff] %v2807_v41 }
 0x34c   : > { %3088 = vst [vmem:[%s5107_s22 + $0x1] sm:$0x1] %v3087_v59 }
 0x34e   : > { %v2808_v14 = vpop.trf.xlu0 }
 0x34f   : > { %2859 = vst [vmem:[%s5114_s26 + $0x30] sm:$0xff] %v2808_v14 }
 0x352   : > { %v2809_v12 = vpop.trf.xlu0 }
 0x353   : > { %2861 = vst [vmem:[%s5114_s26 + $0x40] sm:$0xff] %v2809_v12 }
 0x356   : > { %v2810_v61 = vpop.trf.xlu0 }
 0x357   : > { %2863 = vst [vmem:[%s5114_s26 + $0x50] sm:$0xff] %v2810_v61 }
 0x35a   : > { %v2811_v42 = vpop.trf.xlu0 }
 0x35b   : > { %2865 = vst [vmem:[%s5114_s26 + $0x60] sm:$0xff] %v2811_v42 }
 0x35e   : > { %v2812_v8 = vpop.trf.xlu0 }
 0x35f   : > { %2867 = vst [vmem:[%s5114_s26 + $0x70] sm:$0xff] %v2812_v8 }
 0x362   : > { %v2813_v16 = vpop.trf.xlu0 }
 0x363   : > { %2869 = vst [vmem:[%s5114_s26 + $0x80] sm:$0xff] %v2813_v16 }
 0x366   : > { %v2814_v39 = vpop.trf.xlu0 }
 0x367   : > { %2871 = vst [vmem:[%s5114_s26 + $0x90] sm:$0xff] %v2814_v39 }
 0x36a   : > { %v2815_v60 = vpop.trf.xlu0 }
 0x36b   : > { %2873 = vst [vmem:[%s5114_s26 + $0xa0] sm:$0xff] %v2815_v60 }
 0x36e   : > { %v2816_v62 = vpop.trf.xlu0 }
 0x36f   : > { %2875 = vst [vmem:[%s5114_s26 + $0xb0] sm:$0xff] %v2816_v62 }
 0x372   : > { %v2817_v55 = vpop.trf.xlu0 }
 0x373   : > { %2877 = vst [vmem:[%s5114_s26 + $0xc0] sm:$0xff] %v2817_v55 }
 0x376   : > { %v2818_v7 = vpop.trf.xlu0 }
 0x377   : > { %2879 = vst [vmem:[%s5114_s26 + $0xd0] sm:$0xff] %v2818_v7 }
 0x37a   : > { %v2819_v47 = vpop.trf.xlu0 }
 0x37b   : > { %2881 = vst [vmem:[%s5114_s26 + $0xe0] sm:$0xff] %v2819_v47 }
 0x37e   : > { %v2820_v18 = vpop.trf.xlu0 }
 0x37f   : > { %2883 = vst [vmem:[%s5114_s26 + $0xf0] sm:$0xff] %v2820_v18 }
 0x382   : > { %v2837_v13 = vpop.trf.xlu1 }
 0x383   : > { %2854 = vst [vmem:[%s5114_s26 + $0x8] sm:$0xff] %v2837_v13 }
 0x386   : > { %v2838_v44 = vpop.trf.xlu1 }
 0x387   : > { %2856 = vst [vmem:[%s5114_s26 + $0x18] sm:$0xff] %v2838_v44 }
 0x38a   : > { %v2839_v29 = vpop.trf.xlu1 }
 0x38b   : > { %2858 = vst [vmem:[%s5114_s26 + $0x28] sm:$0xff] %v2839_v29 }
 0x38e   : > { %v2840_v38 = vpop.trf.xlu1 }
 0x38f   : > { %2860 = vst [vmem:[%s5114_s26 + $0x38] sm:$0xff] %v2840_v38 }
 0x392   : > { %v2841_v46 = vpop.trf.xlu1 }
 0x393   : > { %2862 = vst [vmem:[%s5114_s26 + $0x48] sm:$0xff] %v2841_v46 }
 0x396   : > { %v2842_v26 = vpop.trf.xlu1 }
 0x397   : > { %2864 = vst [vmem:[%s5114_s26 + $0x58] sm:$0xff] %v2842_v26 }
 0x39a   : > { %v2843_v53 = vpop.trf.xlu1 }
 0x39b   : > { %2866 = vst [vmem:[%s5114_s26 + $0x68] sm:$0xff] %v2843_v53 }
 0x39e   : > { %v2844_v4 = vpop.trf.xlu1 }
 0x39f   : > { %2868 = vst [vmem:[%s5114_s26 + $0x78] sm:$0xff] %v2844_v4 }
 0x3a2   : > { %v2845_v63 = vpop.trf.xlu1 }
 0x3a3   : > { %2870 = vst [vmem:[%s5114_s26 + $0x88] sm:$0xff] %v2845_v63 }
 0x3a6   : > { %v2846_v31 = vpop.trf.xlu1 }
 0x3a7   : > { %2872 = vst [vmem:[%s5114_s26 + $0x98] sm:$0xff] %v2846_v31 }
 0x3aa   : > { %v2847_v24 = vpop.trf.xlu1 }
 0x3ab   : > { %2874 = vst [vmem:[%s5114_s26 + $0xa8] sm:$0xff] %v2847_v24 }
 0x3ae   : > { %v2848_v2 = vpop.trf.xlu1 }
 0x3af   : > { %2876 = vst [vmem:[%s5114_s26 + $0xb8] sm:$0xff] %v2848_v2 }
 0x3b2   : > { %v2849_v17 = vpop.trf.xlu1 }
 0x3b3   : > { %2878 = vst [vmem:[%s5114_s26 + $0xc8] sm:$0xff] %v2849_v17 }
 0x3b6   : > { %v2850_v6 = vpop.trf.xlu1 }
 0x3b7   : > { %2880 = vst [vmem:[%s5114_s26 + $0xd8] sm:$0xff] %v2850_v6 }
 0x3ba   : > { %v2851_v0 = vpop.trf.xlu1 }
 0x3bb   : > { %2882 = vst [vmem:[%s5114_s26 + $0xe8] sm:$0xff] %v2851_v0 }
 0x3be   : > { %v2852_v20 = vpop.trf.xlu1 }
 0x3bf   : > { %2884 = vst [vmem:[%s5114_s26 + $0xf8] sm:$0xff] %v2852_v20 }
 0x3c0 PF: > { %s15_s17 = sadd.s32 1, %s4077_s17   ;;  %s5201_s15 = smov %s4073_s16 }
 0x3c1   : > { %p12_p5 = scmp.ge.s32.totalorder %s15_s17, 4   ;;  %s5202_s16 = smov %s5204_s18 }
 0x3c3   :  { %14 = sbr.rel (!%p12_p5) target bundleno = 2 (0x2), region = 74 }

</bundles_post_ra>
